<compile_context>
chip_gen: v7x
topology: tpu7x:2x2x1
jax: 0.10.0
libtpu: 0.0.40
codegen_flags: <defaults>
</compile_context>

<pallas_src>
import functools

import jax
import jax.numpy as jnp
from jax.experimental import pallas as pl
from jax.experimental.pallas import tpu as pltpu

_LANE = 128


def _round_up(x: int, m: int) -> int:
    return ((x + m - 1) // m) * m


@functools.lru_cache(maxsize=1)
def _vmem_capacity_bytes() -> int:
    """Physical per-TensorCore VMEM; conservative (v7x-sized) default if query fails."""
    default = 64 * 1024 * 1024
    try:
        info = pltpu.get_tpu_info()
    except Exception:
        return default
    for name in ("vmem_capacity_bytes", "vmem_bytes", "vmem_size_bytes"):
        cap = getattr(info, name, None)
        if isinstance(cap, int) and cap > 0:
            return cap
    return default


def _choose_tiles(batch: int, d: int, vmem_cap: int) -> tuple[int, int]:
    """Pick (tb, tk) = (batch tile, reduction/D tile).

    Budgets with lane-padded widths and includes the double-buffered x tiles, the
    double-buffered (1, tb) output slab (8-sublane padded) and the accumulator,
    keeping ~30% VMEM headroom for weight buffers and Mosaic-internal scratch.
    """
    d_pad = _round_up(max(d, 1), _LANE)
    data_budget = int(vmem_cap * 0.70)
    # Per batch-row bytes: 2 x-buffers (lane-padded) + 2 out buffers (32 B/row each,
    # from 8-sublane padding of (1, tb)) + (1, tb) f32 accumulator (32 B/row).
    per_row = 2 * d_pad * 4 + 96
    tb_budget = data_budget // per_row
    if tb_budget >= _LANE:
        tk = d                                    # whole D in one slab
        tb = (tb_budget // _LANE) * _LANE
    else:
        # D too wide even for a 128-row tile: split the reduction axis.
        tb = 256
        col_budget = data_budget - tb * 96
        tk = max(((col_budget // (2 * tb * 4)) // _LANE) * _LANE, _LANE)
        tk = min(tk, d_pad)
    # Guarantee >=2 batch grid steps for large B so v7x's 2 TensorCores both run
    # (one extra ~0.35us step on v5e/v6e is noise), and never exceed padded B.
    tb = min(tb, _round_up(pl.cdiv(batch, 2), _LANE), _round_up(batch, _LANE))
    return tb, tk


def _logreg_kernel(x_ref, w_ref, b_ref, o_ref, acc_ref, *, d_total: int, tk: int):
    # x_ref: (tb, tk) VMEM batch x feature slab (double-buffered by BlockSpec)
    # w_ref: (1, tk)  VMEM lane-major weight slab (resident when num_k == 1)
    # b_ref: (1,)     SMEM scalar bias
    # o_ref: (1, tb)  VMEM lane-dense output slab (unmasked stores)
    # acc_ref: (1, tb) f32 lane-dense partial-sum accumulator (scratch)
    k = pl.program_id(1)

    @pl.when(k == 0)
    def _():
        acc_ref[...] = jnp.zeros_like(acc_ref)

    # VPU broadcast-multiply + XLU lane reduction (no N=1 MXU matvec).
    xw = x_ref[...].astype(jnp.float32) * w_ref[...].astype(jnp.float32)
    if d_total % tk != 0:
        # Static check: the last K slab is ragged -> mask lanes past D so block
        # padding never reaches the reduction.
        col = k * tk + jax.lax.broadcasted_iota(jnp.int32, xw.shape, 1)
        xw = jnp.where(col < d_total, xw, 0.0)
    acc_ref[...] += jnp.sum(xw, axis=-1).reshape(1, -1)  # sublane->lane relayout rides XLU

    @pl.when(k == pl.num_programs(1) - 1)
    def _():
        # Bias add on the VALU; sigmoid (exp + reciprocal) on the EUP.
        o_ref[...] = jax.nn.sigmoid(acc_ref[...] + b_ref[0])


def logistic_regression_forward(x: jax.Array, weight: jax.Array, bias: jax.Array,
                                *, tiles: tuple[int, int] | None = None) -> jax.Array:
    """sigmoid(x @ weight.T + bias). x: (B, D); weight: (1, D) (PyTorch layout); bias: (1,)."""
    B, D = x.shape
    assert weight.shape == (1, D) and bias.shape == (1,)

    # Tiny / lane-sparse problems: pallas_call fixed cost dwarfs the work and D < 128
    # runs every vreg at partial lane occupancy -> plain XLA already hits roofline.
    if tiles is None and (D < _LANE or B * D < (1 << 16)):
        return jax.nn.sigmoid(
            x.astype(jnp.float32) @ weight.astype(jnp.float32).T + bias.astype(jnp.float32)
        )

    vmem_cap = _vmem_capacity_bytes()
    tb, tk = tiles if tiles is not None else _choose_tiles(B, D, vmem_cap)
    num_b = pl.cdiv(B, tb)
    num_k = pl.cdiv(D, tk)

    out_flat = pl.pallas_call(
        functools.partial(_logreg_kernel, d_total=D, tk=tk),
        out_shape=jax.ShapeDtypeStruct((1, num_b * tb), jnp.float32),
        grid_spec=pltpu.PrefetchScalarGridSpec(
            num_scalar_prefetch=0,
            grid=(num_b, num_k),                                     # reduction axis last
            in_specs=[
                pl.BlockSpec((tb, tk), lambda i, k: (i, k)),         # streamed x slab
                pl.BlockSpec((1, tk), lambda i, k: (0, k)),          # weight slab
                pl.BlockSpec(memory_space=pltpu.MemorySpace.SMEM),   # scalar bias
            ],
            out_specs=pl.BlockSpec((1, tb), lambda i, k: (0, i)),    # lane-dense output
            scratch_shapes=[pltpu.VMEM((1, tb), jnp.float32)],       # f32 accumulator
        ),
        compiler_params=pltpu.CompilerParams(
            dimension_semantics=("parallel", "arbitrary"),
            vmem_limit_bytes=int(vmem_cap * 0.8),
        ),
    )(x, weight, bias)

    return out_flat[0, :B].reshape(B, 1)


if __name__ == "__main__":
    key = jax.random.PRNGKey(0)
    kx, kw, kb, kx2 = jax.random.split(key, 4)

    # --- Main check: Pallas path (lane-dense D, >=2 batch tiles) -----------------
    batch, input_size = 512, 256
    bound = 1.0 / (input_size ** 0.5)
    weight = jax.random.uniform(kw, (1, input_size), jnp.float32, -bound, bound)
    bias = jax.random.uniform(kb, (1,), jnp.float32, -bound, bound)
    x = jax.random.normal(kx, (batch, input_size), jnp.float32)

    out = jax.block_until_ready(logistic_regression_forward(x, weight, bias))
    ref = jax.nn.sigmoid(x @ weight.T + bias)
    assert out.shape == (batch, 1)
    assert jnp.allclose(out, ref, atol=1e-5, rtol=1e-5)

    # --- Exercise the D-tiling (K) path + ragged masking + partial batch tiles ---
    b2, d2 = 200, 300
    bound2 = 1.0 / (d2 ** 0.5)
    w2 = jax.random.uniform(kw, (1, d2), jnp.float32, -bound2, bound2)
    bias2 = jax.random.uniform(kb, (1,), jnp.float32, -bound2, bound2)
    x2 = jax.random.normal(kx2, (b2, d2), jnp.float32)
    out2 = jax.block_until_ready(
        logistic_regression_forward(x2, w2, bias2, tiles=(128, 128)))
    ref2 = jax.nn.sigmoid(x2 @ w2.T + bias2)
    assert out2.shape == (b2, 1)
    assert jnp.allclose(out2, ref2, atol=1e-5, rtol=1e-5)

    # --- Tiny module-default-sized problem takes the XLA fast path ---------------
    b3, d3 = 8, 32
    bound3 = 1.0 / (d3 ** 0.5)
    w3 = jax.random.uniform(kw, (1, d3), jnp.float32, -bound3, bound3)
    bias3 = jax.random.uniform(kb, (1,), jnp.float32, -bound3, bound3)
    x3 = jax.random.normal(kx, (b3, d3), jnp.float32)
    out3 = jax.block_until_ready(logistic_regression_forward(x3, w3, bias3))
    ref3 = jax.nn.sigmoid(x3 @ w3.T + bias3)
    assert out3.shape == (b3, 1)
    assert jnp.allclose(out3, ref3, atol=1e-5, rtol=1e-5)

    print("KERNEL_OK")
</pallas_src>

<mosaic_0001>
module attributes {stable_mosaic.version = 11 : i64} {
  func.func @_logreg_kernel(%arg0: i32, %arg1: i32, %arg2: memref<256x256xf32, #tpu.memory_space<vmem>>, %arg3: memref<1x256xf32, #tpu.memory_space<vmem>>, %arg4: memref<1xf32, #tpu.memory_space<smem>>, %arg5: memref<1x256xf32, #tpu.memory_space<vmem>>, %arg6: memref<1x256xf32, #tpu.memory_space<vmem>>) attributes {dimension_semantics = [#tpu.dimension_semantics<parallel>, #tpu.dimension_semantics<arbitrary>], iteration_bounds = array<i64: 2, 1>, scalar_prefetch = 0 : i64, scratch_operands = 1 : i64, tpu.core_type = #tpu.core_type<tc>, window_params = [{transform_indices = @transform_0, window_bounds = array<i64: 256, 256>}, {transform_indices = @transform_1, window_bounds = array<i64: 1, 256>}, {transform_indices = @transform_2, window_bounds = array<i64: 1>}, {transform_indices = @transform_3, window_bounds = array<i64: 1, 256>}]} {
    %c0_i32 = arith.constant 0 : i32
    %0 = arith.cmpi eq, %arg1, %c0_i32 : i32
    %1 = arith.extui %0 : i1 to i32
    %c0_i32_0 = arith.constant 0 : i32
    %2 = arith.cmpi ne, %1, %c0_i32_0 : i32
    scf.if %2 {
      %cst_10 = arith.constant 0.000000e+00 : f32
      %15 = vector.broadcast %cst_10 : f32 to vector<1x256xf32>
      %c0_11 = arith.constant 0 : index
      %c0_12 = arith.constant 0 : index
      %16 = vector.load %arg6[%c0_11, %c0_12] : memref<1x256xf32, #tpu.memory_space<vmem>>, vector<1x256xf32>
      tpu.vector_store %arg6[%c0_11, %c0_12], %15 {strides = array<i32>} : memref<1x256xf32, #tpu.memory_space<vmem>>, vector<1x256xf32>,
    } else {
    }
    %c0 = arith.constant 0 : index
    %c0_1 = arith.constant 0 : index
    %3 = vector.load %arg2[%c0, %c0_1] : memref<256x256xf32, #tpu.memory_space<vmem>>, vector<256x256xf32>
    %c0_2 = arith.constant 0 : index
    %c0_3 = arith.constant 0 : index
    %4 = vector.load %arg3[%c0_2, %c0_3] : memref<1x256xf32, #tpu.memory_space<vmem>>, vector<1x256xf32>
    %5 = vector.broadcast %4 : vector<1x256xf32> to vector<256x256xf32>
    %6 = arith.mulf %3, %5 : vector<256x256xf32>
    %c0_4 = arith.constant 0 : index
    %c0_5 = arith.constant 0 : index
    %7 = vector.load %arg6[%c0_4, %c0_5] : memref<1x256xf32, #tpu.memory_space<vmem>>, vector<1x256xf32>
    %cst = arith.constant dense<0.000000e+00> : vector<256xf32>
    %8 = vector.multi_reduction <add>, %6, %cst [1] : vector<256x256xf32> to vector<256xf32>
    %9 = vector.shape_cast %8 : vector<256xf32> to vector<1x256xf32>
    %10 = arith.addf %7, %9 : vector<1x256xf32>
    %c0_6 = arith.constant 0 : index
    %c0_7 = arith.constant 0 : index
    %11 = vector.load %arg6[%c0_6, %c0_7] : memref<1x256xf32, #tpu.memory_space<vmem>>, vector<1x256xf32>
    tpu.vector_store %arg6[%c0_6, %c0_7], %10 {strides = array<i32>} : memref<1x256xf32, #tpu.memory_space<vmem>>, vector<1x256xf32>,
    %c0_i32_8 = arith.constant 0 : i32
    %12 = arith.cmpi eq, %arg1, %c0_i32_8 : i32
    %13 = arith.extui %12 : i1 to i32
    %c0_i32_9 = arith.constant 0 : i32
    %14 = arith.cmpi ne, %13, %c0_i32_9 : i32
    scf.if %14 {
      %c0_10 = arith.constant 0 : index
      %c0_11 = arith.constant 0 : index
      %15 = vector.load %arg6[%c0_10, %c0_11] : memref<1x256xf32, #tpu.memory_space<vmem>>, vector<1x256xf32>
      %c0_12 = arith.constant 0 : index
      %16 = memref.load %arg4[%c0_12] : memref<1xf32, #tpu.memory_space<smem>>
      %17 = vector.broadcast %16 : f32 to vector<1x256xf32>
      %18 = arith.addf %15, %17 : vector<1x256xf32>
      %19 = arith.negf %18 : vector<1x256xf32>
      %20 = math.exp %19 : vector<1x256xf32>
      %cst_13 = arith.constant 1.000000e+00 : f32
      %21 = vector.broadcast %cst_13 : f32 to vector<1x256xf32>
      %22 = arith.addf %21, %20 : vector<1x256xf32>
      %23 = arith.divf %21, %22 : vector<1x256xf32>
      %c0_14 = arith.constant 0 : index
      %c0_15 = arith.constant 0 : index
      %24 = vector.load %arg5[%c0_14, %c0_15] : memref<1x256xf32, #tpu.memory_space<vmem>>, vector<1x256xf32>
      tpu.vector_store %arg5[%c0_14, %c0_15], %23 {strides = array<i32>} : memref<1x256xf32, #tpu.memory_space<vmem>>, vector<1x256xf32>,
    } else {
    }
    return
  }
  func.func @transform_0(%arg0: i32, %arg1: i32) -> (i32, i32) {
    %c0_i32 = arith.constant 0 : i32
    return %arg0, %arg1 : i32, i32
  }
  func.func @transform_1(%arg0: i32, %arg1: i32) -> (i32, i32) {
    %c0_i32 = arith.constant 0 : i32
    %c0_i32_0 = arith.constant 0 : i32
    return %c0_i32, %arg1 : i32, i32
  }
  func.func @transform_2(%arg0: i32, %arg1: i32) -> i32 {
    %c0_i32 = arith.constant 0 : i32
    %c0_i32_0 = arith.constant 0 : i32
    return %c0_i32 : i32
  }
  func.func @transform_3(%arg0: i32, %arg1: i32) -> (i32, i32) {
    %c0_i32 = arith.constant 0 : i32
    %c0_i32_0 = arith.constant 0 : i32
    return %c0_i32, %arg0 : i32, i32
  }
}

</mosaic_0001>

<bundles_post_ra>
// kernel: tpu_custom_call.1
= control target key start
LH: loop header
LB: loop body
LE: loop exit
PB: predicated region body
PF: predicated region fallthrough
CT: control target
= control target key end

     0   :  { %s4721_s0 = inlined_call_operand.hbm [shape: f32[512,256], index: 0, kind: input, shape index: {}]   ;;  %s4722_s1 = inlined_call_operand.vmem [shape: f32[1,256], index: 1, kind: input, shape index: {}]   ;;  %s4723_s2 = inlined_call_operand.<no memory space> [shape: f32[1], index: 2, kind: input, shape index: {}]   ;;  %s4724_s3 = inlined_call_operand.hbm [shape: f32[1,512], index: 3, kind: output, shape index: {}]  }
   0x1   :  { %8 = sst [smem:[#allocation3]] %s4723_s2 }
   0x2   :  { %9 = vsyncpa [#allocation5], 0 }
   0x3   :  { %11 = vsyncpa [#allocation5 + $0x1], 0 }
   0x4   :  { %12 = vsyncpa [#allocation6], 0 }
   0x5   :  { %14 = vsyncpa [#allocation6 + $0x1], 0  ;;  %s3767_s14 = smov 0   ;;  %s3769_s15 = smov 0  }
   0x6   :  { %s3771_s16 = smov 0   ;;  %s3773_s17 = smov 0  }
   0x7   :  { %s3775_s18 = smov 0   ;;  %s3777_s19 = smov 0  }
   0x8 LB: > { %s3529_s2 = sadd.s32 4294967295, %s3735_s19   ;;  %s3530_s20 = sadd.s32 4294967294, %s3735_s19   ;;  %s3735_s19 = sphi %s3777_s19, %s20_s19   ;;  %s3731_s18 = sphi %s3775_s18, %s4741_s18   ;;  %s3727_s17 = sphi %s3773_s17, %s4740_s17   ;;  %s3723_s16 = sphi %s3771_s16, %s4739_s16   ;;  %s3719_s15 = sphi %s3769_s15, %s4738_s15   ;;  %s3715_s14 = sphi %s3767_s14, %s4737_s14  }
   0x9   : > { %s32_s21 = sadd.s32 1, %s3731_s18  ;;  %s41_s22 = sadd.s32 1, %s3723_s16 }
   0xa   : > { %p34_p0 = scmp.ge.s32.totalorder %s32_s21, 2  ;;  %p48_p1 = scmp.ne.s32.totalorder %s3723_s16, %s3719_s15 }
   0xb   : > { %p49_p2 = scmp.eq.s32.totalorder %s3735_s19, 0  ;;  %p54_p3 = scmp.ne.s32.totalorder %s3719_s15, %s3715_s14 }
   0xc   : > { %s4743_s21 = smov (%p34_p0, %s32_s21), 0  ;;  %p55_p5 = scmp.eq.s32.totalorder %s3529_s2, 0 }
   0xd   : > { %p3808_p4 = por %p49_p2, %p48_p1  ;;  %s36_s24 = ssub.s32 %s3731_s18, %s4743_s21 }
   0xe   : > { %p125_p6 = scmp.eq.s32.totalorder %s3529_s2, 1  ;;  %p39_p7 = scmp.eq.s32.totalorder %s36_s24, 0 }
   0xf   : > { %p3814_p8 = por %p55_p5, %p54_p3  ;;  %p131_p10 = scmp.eq.s32.totalorder %s3530_s20, 1 }
  0x10   : > { %p3818_p9 = por %p125_p6, %p48_p1  ;;  %p3562_p13 = scmp.lt.s32.totalorder %s3735_s19, 2 }
  0x11   : > { %s3823_s27 = scalar_select %p39_p7, %s3723_s16, %s41_s22  }
  0x12   : > { %s4728_s26 = scalar_select %p3818_p9, 1, 0 }
  0x13   : > { %p3825_p11 = por %p131_p10, %p54_p3  ;;  %s162_s29 = sand.u32 1, %s3723_s16  }
  0x14   : > { %s3534_s30 = sshll.u32 %s162_s29, 9  ;;  %s3548_s4 = sshll.u32 %s3731_s18, 13 }
  0x15   : > { %s4729_s28 = scalar_select %p3825_p11, 1, 0 }
  0x16   : > { %s3836_s7 = scalar_lea.hbm %s4721_s0, %s3548_s4  ;;  %s166_s8 = scalar_lea.vmem [#allocation4], %s3534_s30 }
  0x17   : > { %s176_s9 = sshll.u32 %s166_s8, 4  ;;  %p3842_p0 = pnand %p3562_p13, %p3808_p4  ;;  %s3838_s9 = int_to_ptr.vmem [resolvable:$true] %s176_s9 }
  0x18   : > { %s3847_s11 = scalar_lea.sflag [#allocation5], %s162_s29  ;;  %s3623_s12 = scalar_lea.hbm %s3836_s7, 8192 }
  0x19   : > { %p3624_p2 = scmp.ne.s32.totalorder %s3836_s7, %s3623_s12  ;;  %p3625_p3 = pneg %p3842_p0 }
  0x1a   : > { %s3628_s20 = scalar_lea.hbm %s4721_s0, 16384  ;;  %p3629_p4 = scmp.lt.u32.totalorder %s3836_s7, %s4721_s0 }
  0x1b   : > { %p3626_p5 = pnand %p3625_p3, %p3624_p2  ;;  %p3630_p7 = scmp.lt.u32.totalorder %s3628_s20, %s3623_s12 }
  0x1c   : > { %p3632_p13 = scmp.lt.u32.totalorder %s3623_s12, %s3836_s7 }
  0x1d   : > { %p3627_p6 = pneg %p3626_p5  ;;  %p3631_p10 = por %p3630_p7, %p3629_p4 }
  0x1f   : > { %p3633_p12 = por %p3632_p13, %p3631_p10 }
  0x21   : > { %p3634_p1 = pnand %p3633_p12, %p3627_p6 }
  0x23   : > { %3637 = shalt.err (!%p3634_p1)
}
  0x24   : > { %s3638_s24 = scalar_lea.vmem %s3838_s9, 8192  ;;  %s3737_s29 = smov [#allocation4]  }
  0x25   : > { %p3639_p2 = scmp.ne.s32.totalorder %s3838_s9, %s3638_s24  ;;  %s3643_s30 = sshll.u32 %s3737_s29, 4  ;;  %s3644_s30 = int_to_ptr.vmem [resolvable:$false] %s3643_s30 }
  0x26   : > { %s3645_s4 = scalar_lea.vmem %s3644_s30, 16384  ;;  %p3646_p9 = scmp.lt.s32.totalorder %s3838_s9, %s3644_s30 }
  0x27   : > { %p3641_p5 = pnand %p3639_p2, %p3625_p3  ;;  %p3647_p4 = scmp.lt.s32.totalorder %s3645_s4, %s3638_s24 }
  0x29   : > { %p3642_p11 = pneg %p3641_p5  ;;  %p3648_p7 = por %p3647_p4, %p3646_p9 }
  0x2b   : > { %p3649_p10 = pnand %p3648_p7, %p3642_p11 }
  0x2d   : > { %3652 = shalt.err (!%p3649_p10)
}
  0x2e   : > { %s3738_s5 = smov 256   ;;  %s3739_s6 = smov 16  }
  0x2f   : > { %3557 = dma.hbm_to_vmem [thread:$0]  (!%p3842_p0), %s3836_s7, 8192, %s3838_s9, %s3847_s11, %s3738_s5, %s3738_s5, %s3739_s6  }
  0x30   : > { %p184_p12 = scmp.lt.s32.totalorder %s3735_s19, 3  ;;  %p4731_p1 = scmp.ge.s32.totalorder %s3735_s19, 1 }
  0x32   : > { %p185_p3 = pnand %p4731_p1, %p184_p12 }
  0x33   : > { %s3879_s8 = sand.u32 (!%p185_p3), 1, %s3719_s15  }
  0x34   : > { %188 = sbr.rel (%p185_p3) target bundleno = 578 (0x242), region = 32  ;;  %s3539_s12 = sshll.u32 (!%p185_p3), %s3879_s8, 9 }
  0x35   : > { %s191_s13 = scalar_lea.sflag (!%p185_p3), [#allocation5], %s3879_s8  ;;  %s3883_s2 = scalar_lea.vmem (!%p185_p3), [#allocation4], %s3539_s12 }
  0x3b   : > { %3706 = dma.done.wait (%p3814_p8), %s191_s13, 8192  }
  0x3c   : > { %3708 = vsyncadd (%p3814_p8), %s191_s13, 4294959104  ;;  %v233_v0 = vlaneseq  ;;  %v270_v4 = vld [vmem:[%s3883_s2 + $0x100] sm:$0xff]  ;;  %v271_v5 = vld [vmem:[%s3883_s2 + $0x108] sm:$0xff]  ;;  %vm3206_vm1 = vcmask 130112   ;;  %vm3213_vm2 = vcmask 195712   ;;  %vm3220_vm3 = vcmask 261312  }
  0x3d   : > { %v302_v6 = vld [vmem:[%s4722_s1] sm:$0x3]  ;;  %v238_v9 = vld [vmem:[%s3883_s2] sm:$0xff]  ;;  %v239_v10 = vld [vmem:[%s3883_s2 + $0x8] sm:$0xff]  ;;  %vm3227_vm4 = vcmask 326912   ;;  %vm3234_vm5 = vcmask 392512  }
  0x3e   : > { %v3890_v1 = vshrl.u32 %v233_v0, 7  ;;  %v272_v11 = vld [vmem:[%s3883_s2 + $0x110] sm:$0xff]  ;;  %v273_v12 = vld [vmem:[%s3883_s2 + $0x118] sm:$0xff]  ;;  %v274_v19 = vld [vmem:[%s3883_s2 + $0x120] sm:$0xff]  ;;  %vm4535_vm0 = vcmp.lt.s32.totalorder %v233_v0, 256  ;;  %vm3241_vm6 = vcmask 458112  }
  0x3f   : > { %v240_v13 = vld [vmem:[%s3883_s2 + $0x10] sm:$0xff]  ;;  %v241_v14 = vld [vmem:[%s3883_s2 + $0x18] sm:$0xff]  ;;  %v275_v20 = vld [vmem:[%s3883_s2 + $0x128] sm:$0xff]  ;;  %vm3248_vm7 = vcmask 523712   ;;  %vm3255_vm8 = vcmask 589312   ;;  %vm3262_vm9 = vcmask 654912  }
  0x40   : > { %v3893_v2 = vsub.s32 0, %v3890_v1  ;;  %v3896_v3 = vsub.s32 1, %v3890_v1  ;;  %v242_v27 = vld [vmem:[%s3883_s2 + $0x20] sm:$0xff]  ;;  %v243_v28 = vld [vmem:[%s3883_s2 + $0x28] sm:$0xff]  ;;  %v276_v33 = vld [vmem:[%s3883_s2 + $0x130] sm:$0xff]  ;;  %vm3269_vm10 = vcmask 720512  }
  0x41   : > { %v277_v34 = vld [vmem:[%s3883_s2 + $0x138] sm:$0xff]  ;;  %v244_v37 = vld [vmem:[%s3883_s2 + $0x30] sm:$0xff]  ;;  %v278_v42 = vld [vmem:[%s3883_s2 + $0x140] sm:$0xff]  ;;  %vm3276_vm11 = vcmask 786112   ;;  %vm3283_vm12 = vcmask 851712   ;;  %vm3290_vm13 = vcmask 917312  }
  0x42   : > { %v3904_v7 = vrot.slane %v302_v6, %v3893_v2  ;;  %v3907_v8 = vrot.slane %v302_v6, %v3896_v3  ;;  %v245_v38 = vld [vmem:[%s3883_s2 + $0x38] sm:$0xff]  ;;  %v279_v43 = vld [vmem:[%s3883_s2 + $0x148] sm:$0xff]  ;;  %v246_v47 = vld [vmem:[%s3883_s2 + $0x40] sm:$0xff]  ;;  %vm3297_vm14 = vcmask 982912   ;;  %vm3304_vm15 = vcmask 1048512   ;;  %s3411_s9 = sld [smem:[#allocation3]] }
  0x43   : > { %v247_v48 = vld [vmem:[%s3883_s2 + $0x48] sm:$0xff]  ;;  %v280_v52 = vld [vmem:[%s3883_s2 + $0x150] sm:$0xff]  ;;  %v281_v53 = vld [vmem:[%s3883_s2 + $0x158] sm:$0xff]  ;;  %s3540_s10 = sshll.u32 %s3879_s8, 1  ;;  %s3549_s11 = sshll.u32 %s3727_s17, 5 }
  0x44   : > { %v346_v15 = vmul.f32 %v3904_v7, %v270_v4  ;;  %v347_v16 = vmul.f32 %v3907_v8, %v271_v5  ;;  %v314_v17 = vmul.f32 %v3904_v7, %v238_v9  ;;  %v315_v18 = vmul.f32 %v3907_v8, %v239_v10  ;;  %v248_v57 = vld [vmem:[%s3883_s2 + $0x50] sm:$0xff]  ;;  %v249_v58 = vld [vmem:[%s3883_s2 + $0x58] sm:$0xff]  ;;  %v282_v62 = vld [vmem:[%s3883_s2 + $0x160] sm:$0xff]  ;;  %s220_s20 = scalar_lea.vmem [#allocation7], %s3540_s10  ;;  %s4670_s29 = scalar_lea.hbm %s4724_s3, %s3549_s11 }
  0x45   : > { %v348_v21 = vmul.f32 %v3904_v7, %v272_v11  ;;  %v349_v22 = vmul.f32 %v3907_v8, %v273_v12  ;;  %v316_v23 = vmul.f32 %v3904_v7, %v240_v13  ;;  %v317_v24 = vmul.f32 %v3907_v8, %v241_v14  ;;  %v283_v63 = vld [vmem:[%s3883_s2 + $0x168] sm:$0xff]  ;;  %v250_v9 = vld [vmem:[%s3883_s2 + $0x60] sm:$0xff]  ;;  %v284_v14 = vld [vmem:[%s3883_s2 + $0x170] sm:$0xff]  ;;  %s3436_s22 = sshll.u32 %s220_s20, 4  ;;  %s3422_s30 = scalar_lea.sflag [#allocation6], %s3879_s8  ;;  %s4672_s22 = int_to_ptr.vmem [resolvable:$true] %s3436_s22 }
  0x46   : > { %v427_v25 = vadd.f32 %v347_v16, %v346_v15  ;;  %v379_v26 = vadd.f32 %v315_v18, %v314_v17  ;;  %v350_v29 = vmul.f32 %v3904_v7, %v274_v19  ;;  %v351_v30 = vmul.f32 %v3907_v8, %v275_v20  ;;  %v251_v10 = vld [vmem:[%s3883_s2 + $0x68] sm:$0xff]  ;;  %v285_v15 = vld [vmem:[%s3883_s2 + $0x178] sm:$0xff]  ;;  %v252_v19 = vld [vmem:[%s3883_s2 + $0x70] sm:$0xff]  ;;  %s3653_s4 = scalar_lea.vmem %s4672_s22, 32  ;;  %p4734_p9 = scmp.ne.s32.totalorder %s4728_s26, 0 }
  0x47   : > { %v430_v31 = vadd.f32 %v349_v22, %v348_v21  ;;  %v382_v32 = vadd.f32 %v317_v24, %v316_v23  ;;  %v318_v35 = vmul.f32 %v3904_v7, %v242_v27  ;;  %v319_v36 = vmul.f32 %v3907_v8, %v243_v28  ;;  %v253_v20 = vld [vmem:[%s3883_s2 + $0x78] sm:$0xff]  ;;  %v286_v24 = vld [vmem:[%s3883_s2 + $0x180] sm:$0xff]  ;;  %p3654_p8 = scmp.ne.s32.totalorder %s4672_s22, %s3653_s4  ;;  %s3743_s17 = smov [#allocation7]  }
  0x48   : > { %428 = vadd.xlane.f32.xlu1 %v427_v25  ;;  %380 = vadd.xlane.f32.xlu0 %v379_v26  ;;  %v433_v39 = vadd.f32 %v351_v30, %v350_v29  ;;  %v352_v40 = vmul.f32 %v3904_v7, %v276_v33  ;;  %v353_v41 = vmul.f32 %v3907_v8, %v277_v34  ;;  %v287_v25 = vld [vmem:[%s3883_s2 + $0x188] sm:$0xff]  ;;  %v254_v29 = vld [vmem:[%s3883_s2 + $0x80] sm:$0xff]  ;;  %s3657_s5 = sshll.u32 %s3743_s17, 4  ;;  %s3658_s5 = int_to_ptr.vmem [resolvable:$false] %s3657_s5 }
  0x49   : > { %v385_v44 = vadd.f32 %v319_v36, %v318_v35  ;;  %v320_v45 = vmul.f32 %v3904_v7, %v244_v37  ;;  %v321_v46 = vmul.f32 %v3907_v8, %v245_v38  ;;  %v354_v50 = vmul.f32 %v3904_v7, %v278_v42  ;;  %v255_v30 = vld [vmem:[%s3883_s2 + $0x88] sm:$0xff]  ;;  %v288_v35 = vld [vmem:[%s3883_s2 + $0x190] sm:$0xff]  ;;  %v289_v36 = vld [vmem:[%s3883_s2 + $0x198] sm:$0xff]  ;;  %p3655_p11 = pnand %p3654_p8, %p4734_p9  ;;  %s3659_s6 = scalar_lea.vmem %s3658_s5, 64 }
  0x4a   : > { %v436_v49 = vadd.f32 %v353_v41, %v352_v40  ;;  %v355_v51 = vmul.f32 %v3907_v8, %v279_v43  ;;  %v322_v55 = vmul.f32 %v3904_v7, %v246_v47  ;;  %v323_v56 = vmul.f32 %v3907_v8, %v247_v48  ;;  %v256_v40 = vld [vmem:[%s3883_s2 + $0x90] sm:$0xff]  ;;  %v257_v41 = vld [vmem:[%s3883_s2 + $0x98] sm:$0xff]  ;;  %p3660_p6 = scmp.lt.s32.totalorder %s4672_s22, %s3658_s5  ;;  %p3661_p13 = scmp.lt.s32.totalorder %s3659_s6, %s3653_s4 }
  0x4b   : > { %v388_v54 = vadd.f32 %v321_v46, %v320_v45  ;;  %v356_v60 = vmul.f32 %v3904_v7, %v280_v52  ;;  %v357_v61 = vmul.f32 %v3907_v8, %v281_v53  ;;  %v324_v5 = vmul.f32 %v3904_v7, %v248_v57  ;;  %v290_v45 = vld [vmem:[%s3883_s2 + $0x1a0] sm:$0xff]  ;;  %v291_v46 = vld [vmem:[%s3883_s2 + $0x1a8] sm:$0xff]  ;;  %p3656_p0 = pneg %p3655_p11 }
  0x4c   : > { %431 = vadd.xlane.f32.xlu1 %v430_v31  ;;  %383 = vadd.xlane.f32.xlu0 %v382_v32  ;;  %v439_v59 = vadd.f32 %v355_v51, %v354_v50  ;;  %v391_v4 = vadd.f32 %v323_v56, %v322_v55  ;;  %v325_v6 = vmul.f32 %v3907_v8, %v249_v58  ;;  %v3740_v31 = vmov 0   ;;  %v258_v50 = vld [vmem:[%s3883_s2 + $0xa0] sm:$0xff]  ;;  %v259_v51 = vld [vmem:[%s3883_s2 + $0xa8] sm:$0xff]  ;;  %v292_v55 = vld [vmem:[%s3883_s2 + $0x1b0] sm:$0xff]  ;;  %p3662_p2 = por %p3661_p13, %p3660_p6 }
  0x4d   : > { %v442_v11 = vadd.f32 %v357_v61, %v356_v60  ;;  %v358_v12 = vmul.f32 %v3904_v7, %v282_v62  ;;  %v359_v13 = vmul.f32 %v3907_v8, %v283_v63  ;;  %v326_v17 = vmul.f32 %v3904_v7, %v250_v9  ;;  %3617 = vset.pattern.permute.xlu0 %v3740_v31  ;;  %v293_v56 = vld [vmem:[%s3883_s2 + $0x1b8] sm:$0xff]  ;;  %v260_v60 = vld [vmem:[%s3883_s2 + $0xb0] sm:$0xff] }
  0x4e   : > { %v394_v16 = vadd.f32 %v325_v6, %v324_v5  ;;  %v327_v18 = vmul.f32 %v3907_v8, %v251_v10  ;;  %v360_v22 = vmul.f32 %v3904_v7, %v284_v14  ;;  %v361_v23 = vmul.f32 %v3907_v8, %v285_v15  ;;  %3618 = vset.pattern.permute.xlu1 %v3740_v31  ;;  %v261_v61 = vld [vmem:[%s3883_s2 + $0xb8] sm:$0xff]  ;;  %v294_v5 = vld [vmem:[%s3883_s2 + $0x1c0] sm:$0xff]  ;;  %v295_v6 = vld [vmem:[%s3883_s2 + $0x1c8] sm:$0xff]  ;;  %p3663_p5 = pnand %p3662_p2, %p3656_p0 }
  0x4f   : > { %v445_v21 = vadd.f32 %v359_v13, %v358_v12  ;;  %v328_v27 = vmul.f32 %v3904_v7, %v252_v19  ;;  %v329_v28 = vmul.f32 %v3907_v8, %v253_v20  ;;  %v362_v33 = vmul.f32 %v3904_v7, %v286_v24  ;;  %v262_v12 = vld [vmem:[%s3883_s2 + $0xc0] sm:$0xff]  ;;  %v263_v13 = vld [vmem:[%s3883_s2 + $0xc8] sm:$0xff] }
  0x50   : > { %434 = vadd.xlane.f32.xlu1 %v433_v39  ;;  %386 = vadd.xlane.f32.xlu0 %v385_v44  ;;  %v397_v26 = vadd.f32 %v327_v18, %v326_v17  ;;  %v448_v32 = vadd.f32 %v361_v23, %v360_v22  ;;  %v363_v34 = vmul.f32 %v3907_v8, %v287_v25  ;;  %v296_v17 = vld [vmem:[%s3883_s2 + $0x1d0] sm:$0xff]  ;;  %v297_v18 = vld [vmem:[%s3883_s2 + $0x1d8] sm:$0xff] }
  0x51   : > { %v400_v37 = vadd.f32 %v329_v28, %v328_v27  ;;  %v330_v38 = vmul.f32 %v3904_v7, %v254_v29  ;;  %v331_v39 = vmul.f32 %v3907_v8, %v255_v30  ;;  %v364_v43 = vmul.f32 %v3904_v7, %v288_v35  ;;  %v264_v22 = vld [vmem:[%s3883_s2 + $0xd0] sm:$0xff]  ;;  %v265_v23 = vld [vmem:[%s3883_s2 + $0xd8] sm:$0xff]  ;;  %v298_v27 = vld [vmem:[%s3883_s2 + $0x1e0] sm:$0xff] }
  0x52   : > { %v451_v42 = vadd.f32 %v363_v34, %v362_v33  ;;  %v365_v44 = vmul.f32 %v3907_v8, %v289_v36  ;;  %v332_v48 = vmul.f32 %v3904_v7, %v256_v40  ;;  %v366_v53 = vmul.f32 %v3904_v7, %v290_v45  ;;  %v299_v28 = vld [vmem:[%s3883_s2 + $0x1e8] sm:$0xff] }
  0x53   : > { %v403_v47 = vadd.f32 %v331_v39, %v330_v38  ;;  %v334_v58 = vmul.f32 %v3904_v7, %v258_v50  ;;  %v368_v63 = vmul.f32 %v3904_v7, %v292_v55  ;;  %v336_v10 = vmul.f32 %v3904_v7, %v260_v60  ;;  %v267_v33 = vld [vmem:[%s3883_s2 + $0xe8] sm:$0xff]  ;;  %v301_v38 = vld [vmem:[%s3883_s2 + $0x1f8] sm:$0xff] }
  0x54   : > { %437 = vadd.xlane.f32.xlu1 %v436_v49  ;;  %389 = vadd.xlane.f32.xlu0 %v388_v54  ;;  %v333_v49 = vmul.f32 %v3907_v8, %v257_v41  ;;  %v454_v52 = vadd.f32 %v365_v44, %v364_v43  ;;  %v367_v54 = vmul.f32 %v3907_v8, %v291_v46  ;;  %v269_v43 = vld [vmem:[%s3883_s2 + $0xf8] sm:$0xff]  ;;  %v4036_v55 = vsub.s32 2, %v3890_v1 }
  0x55   : > { %v370_v15 = vmul.f32 %v3904_v7, %v294_v5  ;;  %v338_v20 = vmul.f32 %v3904_v7, %v262_v12  ;;  %v372_v25 = vmul.f32 %v3904_v7, %v296_v17  ;;  %v340_v30 = vmul.f32 %v3904_v7, %v264_v22 }
  0x56   : > { %v406_v57 = vadd.f32 %v333_v49, %v332_v48  ;;  %v457_v62 = vadd.f32 %v367_v54, %v366_v53  ;;  %v341_v31 = vmul.f32 %v3907_v8, %v265_v23  ;;  %v374_v35 = vmul.f32 %v3904_v7, %v298_v27 }
  0x57   : > { %v375_v36 = vmul.f32 %v3907_v8, %v299_v28  ;;  %v343_v41 = vmul.f32 %v3907_v8, %v267_v33  ;;  %v377_v46 = vmul.f32 %v3907_v8, %v301_v38  ;;  %v345_v49 = vmul.f32 %v3907_v8, %v269_v43 }
  0x58   : > { %440 = vadd.xlane.f32.xlu1 %v439_v59  ;;  %392 = vadd.xlane.f32.xlu0 %v391_v4  ;;  %v335_v59 = vmul.f32 %v3907_v8, %v259_v51  ;;  %v369_v4 = vmul.f32 %v3907_v8, %v293_v56  ;;  %v418_v39 = vadd.f32 %v341_v31, %v340_v30  ;;  %v4039_v56 = vsub.s32 3, %v3890_v1 }
  0x59   : > { %v469_v44 = vadd.f32 %v375_v36, %v374_v35 }
  0x5a   : > { %v409_v9 = vadd.f32 %v335_v59, %v334_v58  ;;  %v460_v14 = vadd.f32 %v369_v4, %v368_v63  ;;  %v4051_v58 = vsub.s32 7, %v3890_v1 }
  0x5c   : > { %443 = vadd.xlane.f32.xlu1 %v442_v11  ;;  %395 = vadd.xlane.f32.xlu0 %v394_v16  ;;  %v337_v11 = vmul.f32 %v3907_v8, %v261_v61  ;;  %v371_v16 = vmul.f32 %v3907_v8, %v295_v6 }
  0x5e   : > { %v412_v19 = vadd.f32 %v337_v11, %v336_v10  ;;  %v463_v24 = vadd.f32 %v371_v16, %v370_v15 }
  0x60   : > { %446 = vadd.xlane.f32.xlu1 %v445_v21  ;;  %398 = vadd.xlane.f32.xlu0 %v397_v26  ;;  %v339_v21 = vmul.f32 %v3907_v8, %v263_v13  ;;  %v373_v26 = vmul.f32 %v3907_v8, %v297_v18  ;;  %v4048_v8 = vsub.s32 6, %v3890_v1 }
  0x62   : > { %v415_v29 = vadd.f32 %v339_v21, %v338_v20  ;;  %v466_v34 = vadd.f32 %v373_v26, %v372_v25 }
  0x64   : > { %449 = vadd.xlane.f32.xlu1 %v448_v32  ;;  %401 = vadd.xlane.f32.xlu0 %v400_v37  ;;  %v266_v32 = vld [vmem:[%s3883_s2 + $0xe0] sm:$0xff]  ;;  %v300_v37 = vld [vmem:[%s3883_s2 + $0x1f0] sm:$0xff] }
  0x65   : > { %v342_v40 = vmul.f32 %v3904_v7, %v266_v32  ;;  %v376_v45 = vmul.f32 %v3904_v7, %v300_v37 }
  0x67   : > { %v472_v50 = vadd.f32 %v377_v46, %v376_v45 }
  0x68   : > { %452 = vadd.xlane.f32.xlu1 %v451_v42  ;;  %404 = vadd.xlane.f32.xlu0 %v403_v47  ;;  %v268_v42 = vld [vmem:[%s3883_s2 + $0xf0] sm:$0xff]  ;;  %v421_v47 = vadd.f32 %v343_v41, %v342_v40 }
  0x69   : > { %v344_v48 = vmul.f32 %v3904_v7, %v268_v42  ;;  %v4045_v7 = vsub.s32 5, %v3890_v1 }
  0x6b   : > { %v424_v51 = vadd.f32 %v345_v49, %v344_v48 }
  0x6c   : > { %455 = vadd.xlane.f32.xlu1 %v454_v52  ;;  %407 = vadd.xlane.f32.xlu0 %v406_v57  ;;  %v3741_v52 = vmov 1966171168   ;;  %v4042_v57 = vsub.s32 4, %v3890_v1 }
  0x6d   : > { %v1536_v53 = vunpack.c.l.s4 %v3741_v52 }
  0x6f   : > { %v1537_v54 = vunpack.c.0.s8 %v1536_v53 }
  0x70   : > { %458 = vadd.xlane.f32.xlu1 %v457_v62  ;;  %410 = vadd.xlane.f32.xlu0 %v409_v9 }
  0x71   : > { %v4054_v61 = vsub.s32 %v1537_v54, %v3890_v1 }
  0x74   : > { %461 = vadd.xlane.f32.xlu1 %v460_v14  ;;  %413 = vadd.xlane.f32.xlu0 %v412_v19 }
  0x78   : > { %464 = vadd.xlane.f32.xlu1 %v463_v24  ;;  %416 = vadd.xlane.f32.xlu0 %v415_v29 }
  0x7c   : > { %467 = vadd.xlane.f32.xlu1 %v466_v34  ;;  %419 = vadd.xlane.f32.xlu0 %v418_v39 }
  0x80   : > { %470 = vadd.xlane.f32.xlu1 %v469_v44  ;;  %422 = vadd.xlane.f32.xlu0 %v421_v47 }
  0x84   : > { %473 = vadd.xlane.f32.xlu1 %v472_v50  ;;  %425 = vadd.xlane.f32.xlu0 %v424_v51 }
  0xd5   : > { %v429_v59 = vpop.xlane.xlu1 %428  ;;  %v381_v60 = vpop.xlane.xlu0 %380 }
  0xd6   : > { %v510_v62 = vrot.slane %v381_v60, %v3893_v2  ;;  %v514_v63 = vrot.slane %v381_v60, %v3896_v3  ;;  %v518_v4 = vrot.slane %v381_v60, %v4036_v55  ;;  %v522_v5 = vrot.slane %v381_v60, %v4039_v56 }
  0xd7   : > { %v526_v6 = vrot.slane %v381_v60, %v4042_v57  ;;  %v530_v9 = vrot.slane %v381_v60, %v4045_v7  ;;  %v534_v10 = vrot.slane %v381_v60, %v4048_v8  ;;  %v538_v11 = vrot.slane %v381_v60, %v4051_v58 }
  0xd8   : > { %v1531_v12 = vcombine.low %v510_v62, %v514_v63  ;;  %v1532_v13 = vcombine.low %v518_v4, %v522_v5  ;;  %v1022_v14 = vrot.slane %v429_v59, %v3893_v2  ;;  %v1026_v15 = vrot.slane %v429_v59, %v3896_v3 }
  0xd9   : > { %v4066_v16 = vpop.xlane.xlu1 %431  ;;  %v384_v17 = vpop.xlane.xlu0 %383  ;;  %v1533_v18 = vcombine.low %v526_v6, %v530_v9  ;;  %v1534_v19 = vcombine.low %v534_v10, %v538_v11  ;;  %v1030_v20 = vrot.slane %v429_v59, %v4036_v55  ;;  %v1034_v21 = vrot.slane %v429_v59, %v4039_v56 }
  0xda   : > { %v1541_v22 = vrot.slane %v1531_v12, %v4054_v61  ;;  %v1548_v23 = vrot.slane %v1532_v13, %v4054_v61  ;;  %v542_v24 = vrot.slane %v384_v17, %v3893_v2  ;;  %v546_v25 = vrot.slane %v384_v17, %v3896_v3 }
  0xdb   : > { %v1555_v26 = vrot.slane %v1533_v18, %v4054_v61  ;;  %v1562_v27 = vrot.slane %v1534_v19, %v4054_v61  ;;  %v550_v28 = vrot.slane %v384_v17, %v4036_v55  ;;  %v554_v29 = vrot.slane %v384_v17, %v4039_v56 }
  0xdc   : > { %v1563_v30 = vcombine.low %v1541_v22, %v1548_v23  ;;  %v558_v31 = vrot.slane %v384_v17, %v4042_v57  ;;  %v562_v32 = vrot.slane %v384_v17, %v4045_v7  ;;  %v566_v33 = vrot.slane %v384_v17, %v4048_v8 }
  0xdd   : > { %v4081_v34 = vpop.xlane.xlu1 %434  ;;  %v1564_v35 = vcombine.low %v1555_v26, %v1562_v27  ;;  %v570_v36 = vrot.slane %v384_v17, %v4051_v58  ;;  %v1580_v37 = vcombine.low %v542_v24, %v546_v25  ;;  %v1581_v38 = vcombine.low %v550_v28, %v554_v29 }
  0xde   : > { %v1571_v39 = vrot.slane %v1563_v30, %v4054_v61  ;;  %v1582_v40 = vcombine.low %v558_v31, %v562_v32  ;;  %v1038_v41 = vrot.slane %v429_v59, %v4042_v57  ;;  %v1042_v42 = vrot.slane %v429_v59, %v4045_v7 }
  0xdf   : > { %v1578_v43 = vrot.slane %v1564_v35, %v4054_v61  ;;  %v1583_v44 = vcombine.low %v566_v33, %v570_v36  ;;  %v1590_v45 = vrot.slane %v1580_v37, %v4054_v61  ;;  %v1597_v46 = vrot.slane %v1581_v38, %v4054_v61  ;;  %v387_v33 = vpop.xlane.xlu0 %386 }
  0xe0   : > { %v1604_v47 = vrot.slane %v1582_v40, %v4054_v61  ;;  %v1046_v48 = vrot.slane %v429_v59, %v4048_v8  ;;  %v1050_v49 = vrot.slane %v429_v59, %v4051_v58  ;;  %v2315_v50 = vcombine.low %v1022_v14, %v1026_v15 }
  0xe1   : > { %v4093_v51 = vpop.xlane.xlu1 %437  ;;  %v1579_v52 = vcombine.low %v1571_v39, %v1578_v43  ;;  %v1611_v53 = vrot.slane %v1583_v44, %v4054_v61  ;;  %v1612_v54 = vcombine.low %v1590_v45, %v1597_v46  ;;  %v2316_v60 = vcombine.low %v1030_v20, %v1034_v21 }
  0xe2   : > { %v2317_v62 = vcombine.low %v1038_v41, %v1042_v42  ;;  %v2318_v63 = vcombine.low %v1046_v48, %v1050_v49  ;;  %v2325_v4 = vrot.slane %v2315_v50, %v4054_v61  ;;  %v1054_v5 = vrot.slane %v4066_v16, %v3893_v2 }
  0xe3   : > { %3100 = vperm.xlu0 %3617, %v1579_v52   ;;  %v1613_v6 = vcombine.low %v1604_v47, %v1611_v53  ;;  %v1620_v9 = vrot.slane %v1612_v54, %v4054_v61  ;;  %v2332_v59 = vrot.slane %v2316_v60, %v4054_v61  ;;  %v1058_v10 = vrot.slane %v4066_v16, %v3896_v3 }
  0xe4   : > { %v2339_v11 = vrot.slane %v2317_v62, %v4054_v61  ;;  %v2346_v12 = vrot.slane %v2318_v63, %v4054_v61  ;;  %v1062_v13 = vrot.slane %v4066_v16, %v4036_v55  ;;  %v1066_v14 = vrot.slane %v4066_v16, %v4039_v56 }
  0xe5   : > { %v441_v15 = vpop.xlane.xlu1 %440  ;;  %v1627_v17 = vrot.slane %v1613_v6, %v4054_v61  ;;  %v2347_v18 = vcombine.low %v2325_v4, %v2332_v59  ;;  %v1070_v19 = vrot.slane %v4066_v16, %v4042_v57  ;;  %v1074_v20 = vrot.slane %v4066_v16, %v4045_v7 }
  0xe6   : > { %v2348_v21 = vcombine.low %v2339_v11, %v2346_v12  ;;  %v1078_v22 = vrot.slane %v4066_v16, %v4048_v8  ;;  %v1082_v23 = vrot.slane %v4066_v16, %v4051_v58  ;;  %v2364_v24 = vcombine.low %v1054_v5, %v1058_v10 }
  0xe7   : > { %v1628_v25 = vcombine.low %v1620_v9, %v1627_v17  ;;  %v2355_v26 = vrot.slane %v2347_v18, %v4054_v61  ;;  %v2365_v27 = vcombine.low %v1062_v13, %v1066_v14  ;;  %v2366_v28 = vcombine.low %v1070_v19, %v1074_v20 }
  0xe8   : > { %v2362_v29 = vrot.slane %v2348_v21, %v4054_v61  ;;  %v2367_v30 = vcombine.low %v1078_v22, %v1082_v23  ;;  %v2374_v31 = vrot.slane %v2364_v24, %v4054_v61  ;;  %v1150_v32 = vrot.slane %v441_v15, %v3893_v2 }
  0xe9   : > { %3103 = vperm.xlu1 %3618, %v1628_v25   ;;  %v2381_v35 = vrot.slane %v2365_v27, %v4054_v61  ;;  %v2388_v36 = vrot.slane %v2366_v28, %v4054_v61  ;;  %v1154_v16 = vrot.slane %v441_v15, %v3896_v3  ;;  %v1158_v37 = vrot.slane %v441_v15, %v4036_v55  ;;  %v444_v5 = vpop.xlane.xlu1 %443 }
  0xea   : > { %v2363_v38 = vcombine.low %v2355_v26, %v2362_v29  ;;  %v2395_v39 = vrot.slane %v2367_v30, %v4054_v61  ;;  %v1162_v40 = vrot.slane %v441_v15, %v4039_v56  ;;  %v1166_v41 = vrot.slane %v441_v15, %v4042_v57 }
  0xeb   : > { %v2396_v42 = vcombine.low %v2374_v31, %v2381_v35  ;;  %v1170_v43 = vrot.slane %v441_v15, %v4045_v7  ;;  %v1174_v44 = vrot.slane %v441_v15, %v4048_v8  ;;  %v1178_v45 = vrot.slane %v441_v15, %v4051_v58 }
  0xec   : > { %v2397_v46 = vcombine.low %v2388_v36, %v2395_v39  ;;  %v2511_v47 = vcombine.low %v1150_v32, %v1154_v16  ;;  %v2512_v48 = vcombine.low %v1158_v37, %v1162_v40  ;;  %v574_v49 = vrot.slane %v387_v33, %v3893_v2 }
  0xed   : > { %3148 = vperm.xlu1 %3618, %v2363_v38   ;;  %v2404_v50 = vrot.slane %v2396_v42, %v4054_v61  ;;  %v2513_v52 = vcombine.low %v1166_v41, %v1170_v43  ;;  %v2514_v53 = vcombine.low %v1174_v44, %v1178_v45  ;;  %v578_v54 = vrot.slane %v387_v33, %v3896_v3 }
  0xee   : > { %v2411_v60 = vrot.slane %v2397_v46, %v4054_v61  ;;  %v2521_v62 = vrot.slane %v2511_v47, %v4054_v61  ;;  %v2528_v63 = vrot.slane %v2512_v48, %v4054_v61  ;;  %v582_v4 = vrot.slane %v387_v33, %v4036_v55 }
  0xef   : > { %v2535_v6 = vrot.slane %v2513_v52, %v4054_v61  ;;  %v2542_v9 = vrot.slane %v2514_v53, %v4054_v61  ;;  %v586_v59 = vrot.slane %v387_v33, %v4039_v56  ;;  %v590_v10 = vrot.slane %v387_v33, %v4042_v57  ;;  %v447_v53 = vpop.xlane.xlu1 %446 }
  0xf0   : > { %v2412_v11 = vcombine.low %v2404_v50, %v2411_v60  ;;  %v2543_v12 = vcombine.low %v2521_v62, %v2528_v63  ;;  %v594_v13 = vrot.slane %v387_v33, %v4045_v7  ;;  %v598_v14 = vrot.slane %v387_v33, %v4048_v8 }
  0xf1   : > { %v2544_v15 = vcombine.low %v2535_v6, %v2542_v9  ;;  %v602_v17 = vrot.slane %v387_v33, %v4051_v58  ;;  %v1629_v18 = vcombine.low %v574_v49, %v578_v54  ;;  %v1630_v19 = vcombine.low %v582_v4, %v586_v59 }
  0xf2   : > { %3151 = vperm.xlu1 %3618, %v2412_v11   ;;  %v2551_v20 = vrot.slane %v2543_v12, %v4054_v61  ;;  %v1631_v21 = vcombine.low %v590_v10, %v594_v13  ;;  %v1182_v22 = vrot.slane %v444_v5, %v3893_v2  ;;  %v1186_v23 = vrot.slane %v444_v5, %v3896_v3 }
  0xf3   : > { %v2558_v24 = vrot.slane %v2544_v15, %v4054_v61  ;;  %v1632_v25 = vcombine.low %v598_v14, %v602_v17  ;;  %v1639_v26 = vrot.slane %v1629_v18, %v4054_v61  ;;  %v1646_v27 = vrot.slane %v1630_v19, %v4054_v61 }
  0xf4   : > { %v1653_v28 = vrot.slane %v1631_v21, %v4054_v61  ;;  %v1190_v29 = vrot.slane %v444_v5, %v4036_v55  ;;  %v1194_v30 = vrot.slane %v444_v5, %v4039_v56  ;;  %v1198_v31 = vrot.slane %v444_v5, %v4042_v57  ;;  %v390_v21 = vpop.xlane.xlu0 %389 }
  0xf5   : > { %v2559_v32 = vcombine.low %v2551_v20, %v2558_v24  ;;  %v1660_v33 = vrot.slane %v1632_v25, %v4054_v61  ;;  %v1661_v35 = vcombine.low %v1639_v26, %v1646_v27  ;;  %v1202_v36 = vrot.slane %v444_v5, %v4045_v7 }
  0xf6   : > { %v1206_v16 = vrot.slane %v444_v5, %v4048_v8  ;;  %v1210_v37 = vrot.slane %v444_v5, %v4051_v58  ;;  %v2560_v38 = vcombine.low %v1182_v22, %v1186_v23  ;;  %v2561_v39 = vcombine.low %v1190_v29, %v1194_v30 }
  0xf7   : > { %3160 = vperm.xlu0 %3617, %v2559_v32   ;;  %v1662_v40 = vcombine.low %v1653_v28, %v1660_v33  ;;  %v1669_v41 = vrot.slane %v1661_v35, %v4054_v61  ;;  %v2562_v42 = vcombine.low %v1198_v31, %v1202_v36  ;;  %v1086_v43 = vrot.slane %v4081_v34, %v3893_v2 }
  0xf8   : > { %v2563_v44 = vcombine.low %v1206_v16, %v1210_v37  ;;  %v2570_v45 = vrot.slane %v2560_v38, %v4054_v61  ;;  %v2577_v46 = vrot.slane %v2561_v39, %v4054_v61  ;;  %v1090_v47 = vrot.slane %v4081_v34, %v3896_v3 }
  0xf9   : > { %v1676_v48 = vrot.slane %v1662_v40, %v4054_v61  ;;  %v2584_v49 = vrot.slane %v2562_v42, %v4054_v61  ;;  %v1094_v50 = vrot.slane %v4081_v34, %v4036_v55  ;;  %v1098_v52 = vrot.slane %v4081_v34, %v4039_v56  ;;  %v450_v42 = vpop.xlane.xlu1 %449 }
  0xfa   : > { %v2591_v54 = vrot.slane %v2563_v44, %v4054_v61  ;;  %v2592_v60 = vcombine.low %v2570_v45, %v2577_v46  ;;  %v1102_v62 = vrot.slane %v4081_v34, %v4042_v57  ;;  %v1106_v63 = vrot.slane %v4081_v34, %v4045_v7 }
  0xfb   : > { %v1677_v4 = vcombine.low %v1669_v41, %v1676_v48  ;;  %v1110_v5 = vrot.slane %v4081_v34, %v4048_v8  ;;  %v1114_v6 = vrot.slane %v4081_v34, %v4051_v58  ;;  %v2413_v9 = vcombine.low %v1086_v43, %v1090_v47 }
  0xfc   : > { %v2593_v59 = vcombine.low %v2584_v49, %v2591_v54  ;;  %v2600_v10 = vrot.slane %v2592_v60, %v4054_v61  ;;  %v2414_v11 = vcombine.low %v1094_v50, %v1098_v52  ;;  %v2415_v12 = vcombine.low %v1102_v62, %v1106_v63 }
  0xfd   : > { %3106 = vperm.xlu1 %3618, %v1677_v4   ;;  %v2416_v13 = vcombine.low %v1110_v5, %v1114_v6  ;;  %v2423_v14 = vrot.slane %v2413_v9, %v4054_v61  ;;  %v1214_v15 = vrot.slane %v447_v53, %v3893_v2  ;;  %v1218_v17 = vrot.slane %v447_v53, %v3896_v3 }
  0xfe   : > { %v2607_v18 = vrot.slane %v2593_v59, %v4054_v61  ;;  %v2430_v19 = vrot.slane %v2414_v11, %v4054_v61  ;;  %v2437_v34 = vrot.slane %v2415_v12, %v4054_v61  ;;  %v1222_v20 = vrot.slane %v447_v53, %v4036_v55 }
  0xff   : > { %v2444_v22 = vrot.slane %v2416_v13, %v4054_v61  ;;  %v1226_v23 = vrot.slane %v447_v53, %v4039_v56  ;;  %v1230_v24 = vrot.slane %v447_v53, %v4042_v57  ;;  %v1234_v25 = vrot.slane %v447_v53, %v4045_v7 }
 0x100   : > { %v2608_v26 = vcombine.low %v2600_v10, %v2607_v18  ;;  %v2445_v27 = vcombine.low %v2423_v14, %v2430_v19  ;;  %v1238_v28 = vrot.slane %v447_v53, %v4048_v8  ;;  %v1242_v29 = vrot.slane %v447_v53, %v4051_v58 }
 0x101   : > { %v2446_v30 = vcombine.low %v2437_v34, %v2444_v22  ;;  %v2609_v31 = vcombine.low %v1214_v15, %v1218_v17  ;;  %v2610_v32 = vcombine.low %v1222_v20, %v1226_v23  ;;  %v2611_v33 = vcombine.low %v1230_v24, %v1234_v25 }
 0x102   : > { %3163 = vperm.xlu0 %3617, %v2608_v26   ;;  %v2453_v35 = vrot.slane %v2445_v27, %v4054_v61  ;;  %v2612_v36 = vcombine.low %v1238_v28, %v1242_v29  ;;  %v606_v16 = vrot.slane %v390_v21, %v3893_v2  ;;  %v610_v37 = vrot.slane %v390_v21, %v3896_v3 }
 0x103   : > { %v2460_v38 = vrot.slane %v2446_v30, %v4054_v61  ;;  %v2619_v39 = vrot.slane %v2609_v31, %v4054_v61  ;;  %v2626_v40 = vrot.slane %v2610_v32, %v4054_v61  ;;  %v2633_v41 = vrot.slane %v2611_v33, %v4054_v61 }
 0x104   : > { %v2640_v43 = vrot.slane %v2612_v36, %v4054_v61  ;;  %v614_v44 = vrot.slane %v390_v21, %v4036_v55  ;;  %v618_v45 = vrot.slane %v390_v21, %v4039_v56  ;;  %v622_v46 = vrot.slane %v390_v21, %v4042_v57  ;;  %v453_v36 = vpop.xlane.xlu1 %452 }
 0x105   : > { %v2461_v47 = vcombine.low %v2453_v35, %v2460_v38  ;;  %v2641_v48 = vcombine.low %v2619_v39, %v2626_v40  ;;  %v626_v49 = vrot.slane %v390_v21, %v4045_v7  ;;  %v630_v50 = vrot.slane %v390_v21, %v4048_v8 }
 0x106   : > { %v2642_v52 = vcombine.low %v2633_v41, %v2640_v43  ;;  %v634_v53 = vrot.slane %v390_v21, %v4051_v58  ;;  %v1678_v54 = vcombine.low %v606_v16, %v610_v37  ;;  %v1679_v60 = vcombine.low %v614_v44, %v618_v45 }
 0x107   : > { %3154 = vperm.xlu1 %3618, %v2461_v47   ;;  %v2649_v62 = vrot.slane %v2641_v48, %v4054_v61  ;;  %v1680_v63 = vcombine.low %v622_v46, %v626_v49  ;;  %v1246_v4 = vrot.slane %v450_v42, %v3893_v2  ;;  %v1250_v5 = vrot.slane %v450_v42, %v3896_v3 }
 0x108   : > { %v2656_v6 = vrot.slane %v2642_v52, %v4054_v61  ;;  %v1681_v9 = vcombine.low %v630_v50, %v634_v53  ;;  %v1688_v59 = vrot.slane %v1678_v54, %v4054_v61  ;;  %v1695_v10 = vrot.slane %v1679_v60, %v4054_v61 }
 0x109   : > { %v1702_v11 = vrot.slane %v1680_v63, %v4054_v61  ;;  %v1254_v12 = vrot.slane %v450_v42, %v4036_v55  ;;  %v1258_v13 = vrot.slane %v450_v42, %v4039_v56  ;;  %v1262_v14 = vrot.slane %v450_v42, %v4042_v57 }
 0x10a   : > { %v2657_v15 = vcombine.low %v2649_v62, %v2656_v6  ;;  %v1709_v17 = vrot.slane %v1681_v9, %v4054_v61  ;;  %v1710_v18 = vcombine.low %v1688_v59, %v1695_v10  ;;  %v1266_v19 = vrot.slane %v450_v42, %v4045_v7  ;;  %v393_v62 = vpop.xlane.xlu0 %392 }
 0x10b   : > { %v1270_v34 = vrot.slane %v450_v42, %v4048_v8  ;;  %v1274_v20 = vrot.slane %v450_v42, %v4051_v58  ;;  %v2658_v21 = vcombine.low %v1246_v4, %v1250_v5  ;;  %v2659_v22 = vcombine.low %v1254_v12, %v1258_v13 }
 0x10c   : > { %3166 = vperm.xlu0 %3617, %v2657_v15   ;;  %v1711_v23 = vcombine.low %v1702_v11, %v1709_v17  ;;  %v1718_v24 = vrot.slane %v1710_v18, %v4054_v61  ;;  %v2660_v25 = vcombine.low %v1262_v14, %v1266_v19  ;;  %v1118_v26 = vrot.slane %v4093_v51, %v3893_v2 }
 0x10d   : > { %v2661_v27 = vcombine.low %v1270_v34, %v1274_v20  ;;  %v2668_v28 = vrot.slane %v2658_v21, %v4054_v61  ;;  %v2675_v29 = vrot.slane %v2659_v22, %v4054_v61  ;;  %v1122_v30 = vrot.slane %v4093_v51, %v3896_v3 }
 0x10e   : > { %v1725_v31 = vrot.slane %v1711_v23, %v4054_v61  ;;  %v2682_v32 = vrot.slane %v2660_v25, %v4054_v61  ;;  %v1126_v33 = vrot.slane %v4093_v51, %v4036_v55  ;;  %v1130_v35 = vrot.slane %v4093_v51, %v4039_v56 }
 0x10f   : > { %v2689_v16 = vrot.slane %v2661_v27, %v4054_v61  ;;  %v2690_v37 = vcombine.low %v2668_v28, %v2675_v29  ;;  %v1134_v38 = vrot.slane %v4093_v51, %v4042_v57  ;;  %v1138_v39 = vrot.slane %v4093_v51, %v4045_v7 }
 0x110   : > { %v1726_v40 = vcombine.low %v1718_v24, %v1725_v31  ;;  %v1142_v41 = vrot.slane %v4093_v51, %v4048_v8  ;;  %v1146_v42 = vrot.slane %v4093_v51, %v4051_v58  ;;  %v2462_v43 = vcombine.low %v1118_v26, %v1122_v30  ;;  %v456_v24 = vpop.xlane.xlu1 %455 }
 0x111   : > { %v2691_v44 = vcombine.low %v2682_v32, %v2689_v16  ;;  %v2698_v45 = vrot.slane %v2690_v37, %v4054_v61  ;;  %v2463_v46 = vcombine.low %v1126_v33, %v1130_v35  ;;  %v2464_v47 = vcombine.low %v1134_v38, %v1138_v39 }
 0x112   : > { %3109 = vperm.xlu1 %3618, %v1726_v40   ;;  %v2465_v48 = vcombine.low %v1142_v41, %v1146_v42  ;;  %v2472_v49 = vrot.slane %v2462_v43, %v4054_v61  ;;  %v1278_v50 = vrot.slane %v453_v36, %v3893_v2  ;;  %v1282_v52 = vrot.slane %v453_v36, %v3896_v3 }
 0x113   : > { %v2705_v53 = vrot.slane %v2691_v44, %v4054_v61  ;;  %v2479_v54 = vrot.slane %v2463_v46, %v4054_v61  ;;  %v2486_v51 = vrot.slane %v2464_v47, %v4054_v61  ;;  %v1286_v60 = vrot.slane %v453_v36, %v4036_v55 }
 0x114   : > { %v2493_v63 = vrot.slane %v2465_v48, %v4054_v61  ;;  %v1290_v4 = vrot.slane %v453_v36, %v4039_v56  ;;  %v1294_v5 = vrot.slane %v453_v36, %v4042_v57  ;;  %v1298_v6 = vrot.slane %v453_v36, %v4045_v7 }
 0x115   : > { %v2706_v9 = vcombine.low %v2698_v45, %v2705_v53  ;;  %v2494_v59 = vcombine.low %v2472_v49, %v2479_v54  ;;  %v1302_v10 = vrot.slane %v453_v36, %v4048_v8  ;;  %v1306_v11 = vrot.slane %v453_v36, %v4051_v58  ;;  %v396_v45 = vpop.xlane.xlu0 %395 }
 0x116   : > { %v2495_v12 = vcombine.low %v2486_v51, %v2493_v63  ;;  %v2707_v13 = vcombine.low %v1278_v50, %v1282_v52  ;;  %v2708_v14 = vcombine.low %v1286_v60, %v1290_v4  ;;  %v2709_v15 = vcombine.low %v1294_v5, %v1298_v6 }
 0x117   : > { %3169 = vperm.xlu0 %3617, %v2706_v9   ;;  %v2502_v17 = vrot.slane %v2494_v59, %v4054_v61  ;;  %v2710_v18 = vcombine.low %v1302_v10, %v1306_v11  ;;  %v638_v19 = vrot.slane %v393_v62, %v3893_v2  ;;  %v642_v34 = vrot.slane %v393_v62, %v3896_v3 }
 0x118   : > { %v2509_v20 = vrot.slane %v2495_v12, %v4054_v61  ;;  %v2717_v21 = vrot.slane %v2707_v13, %v4054_v61  ;;  %v2724_v22 = vrot.slane %v2708_v14, %v4054_v61  ;;  %v2731_v23 = vrot.slane %v2709_v15, %v4054_v61 }
 0x119   : > { %v2738_v25 = vrot.slane %v2710_v18, %v4054_v61  ;;  %v646_v26 = vrot.slane %v393_v62, %v4036_v55  ;;  %v650_v27 = vrot.slane %v393_v62, %v4039_v56  ;;  %v654_v28 = vrot.slane %v393_v62, %v4042_v57  ;;  %v459_v18 = vpop.xlane.xlu1 %458 }
 0x11a   : > { %v2510_v29 = vcombine.low %v2502_v17, %v2509_v20  ;;  %v2739_v30 = vcombine.low %v2717_v21, %v2724_v22  ;;  %v658_v31 = vrot.slane %v393_v62, %v4045_v7  ;;  %v662_v32 = vrot.slane %v393_v62, %v4048_v8 }
 0x11b   : > { %v2740_v33 = vcombine.low %v2731_v23, %v2738_v25  ;;  %v666_v35 = vrot.slane %v393_v62, %v4051_v58  ;;  %v1727_v36 = vcombine.low %v638_v19, %v642_v34  ;;  %v1728_v16 = vcombine.low %v646_v26, %v650_v27 }
 0x11c   : > { %3157 = vperm.xlu1 %3618, %v2510_v29   ;;  %v2747_v37 = vrot.slane %v2739_v30, %v4054_v61  ;;  %v1729_v38 = vcombine.low %v654_v28, %v658_v31  ;;  %v1310_v39 = vrot.slane %v456_v24, %v3893_v2  ;;  %v1314_v40 = vrot.slane %v456_v24, %v3896_v3 }
 0x11d   : > { %v2754_v41 = vrot.slane %v2740_v33, %v4054_v61  ;;  %v1730_v42 = vcombine.low %v662_v32, %v666_v35  ;;  %v1737_v43 = vrot.slane %v1727_v36, %v4054_v61  ;;  %v1744_v44 = vrot.slane %v1728_v16, %v4054_v61 }
 0x11e   : > { %v1751_v46 = vrot.slane %v1729_v38, %v4054_v61  ;;  %v1318_v47 = vrot.slane %v456_v24, %v4036_v55  ;;  %v1322_v48 = vrot.slane %v456_v24, %v4039_v56  ;;  %v1326_v49 = vrot.slane %v456_v24, %v4042_v57  ;;  %v399_v38 = vpop.xlane.xlu0 %398 }
 0x11f   : > { %v2755_v50 = vcombine.low %v2747_v37, %v2754_v41  ;;  %v1758_v52 = vrot.slane %v1730_v42, %v4054_v61  ;;  %v1759_v53 = vcombine.low %v1737_v43, %v1744_v44  ;;  %v1330_v54 = vrot.slane %v456_v24, %v4045_v7 }
 0x120   : > { %v1334_v51 = vrot.slane %v456_v24, %v4048_v8  ;;  %v1338_v60 = vrot.slane %v456_v24, %v4051_v58  ;;  %v2756_v62 = vcombine.low %v1310_v39, %v1314_v40  ;;  %v2757_v63 = vcombine.low %v1318_v47, %v1322_v48 }
 0x121   : > { %3172 = vperm.xlu0 %3617, %v2755_v50   ;;  %v1760_v4 = vcombine.low %v1751_v46, %v1758_v52  ;;  %v1767_v5 = vrot.slane %v1759_v53, %v4054_v61  ;;  %v2758_v6 = vcombine.low %v1326_v49, %v1330_v54  ;;  %v670_v9 = vrot.slane %v396_v45, %v3893_v2 }
 0x122   : > { %v2759_v59 = vcombine.low %v1334_v51, %v1338_v60  ;;  %v2766_v10 = vrot.slane %v2756_v62, %v4054_v61  ;;  %v2773_v11 = vrot.slane %v2757_v63, %v4054_v61  ;;  %v674_v12 = vrot.slane %v396_v45, %v3896_v3 }
 0x123   : > { %v1774_v13 = vrot.slane %v1760_v4, %v4054_v61  ;;  %v2780_v14 = vrot.slane %v2758_v6, %v4054_v61  ;;  %v678_v15 = vrot.slane %v396_v45, %v4036_v55  ;;  %v682_v17 = vrot.slane %v396_v45, %v4039_v56 }
 0x124   : > { %v2787_v19 = vrot.slane %v2759_v59, %v4054_v61  ;;  %v2788_v34 = vcombine.low %v2766_v10, %v2773_v11  ;;  %v686_v20 = vrot.slane %v396_v45, %v4042_v57  ;;  %v690_v21 = vrot.slane %v396_v45, %v4045_v7 }
 0x125   : > { %v1775_v22 = vcombine.low %v1767_v5, %v1774_v13  ;;  %v694_v23 = vrot.slane %v396_v45, %v4048_v8  ;;  %v698_v24 = vrot.slane %v396_v45, %v4051_v58  ;;  %v1776_v25 = vcombine.low %v670_v9, %v674_v12  ;;  %v462_v5 = vpop.xlane.xlu1 %461 }
 0x126   : > { %v2789_v26 = vcombine.low %v2780_v14, %v2787_v19  ;;  %v2796_v27 = vrot.slane %v2788_v34, %v4054_v61  ;;  %v1777_v28 = vcombine.low %v678_v15, %v682_v17  ;;  %v1778_v29 = vcombine.low %v686_v20, %v690_v21 }
 0x127   : > { %3112 = vperm.xlu1 %3618, %v1775_v22   ;;  %v1779_v30 = vcombine.low %v694_v23, %v698_v24  ;;  %v1786_v31 = vrot.slane %v1776_v25, %v4054_v61  ;;  %v1342_v32 = vrot.slane %v459_v18, %v3893_v2  ;;  %v1346_v33 = vrot.slane %v459_v18, %v3896_v3 }
 0x128   : > { %v2803_v35 = vrot.slane %v2789_v26, %v4054_v61  ;;  %v1793_v36 = vrot.slane %v1777_v28, %v4054_v61  ;;  %v1800_v16 = vrot.slane %v1778_v29, %v4054_v61  ;;  %v1350_v37 = vrot.slane %v459_v18, %v4036_v55 }
 0x129   : > { %v1807_v39 = vrot.slane %v1779_v30, %v4054_v61  ;;  %v1354_v40 = vrot.slane %v459_v18, %v4039_v56  ;;  %v1358_v41 = vrot.slane %v459_v18, %v4042_v57  ;;  %v1362_v42 = vrot.slane %v459_v18, %v4045_v7 }
 0x12a   : > { %v2804_v43 = vcombine.low %v2796_v27, %v2803_v35  ;;  %v1808_v44 = vcombine.low %v1786_v31, %v1793_v36  ;;  %v1366_v45 = vrot.slane %v459_v18, %v4048_v8  ;;  %v1370_v46 = vrot.slane %v459_v18, %v4051_v58  ;;  %v402_v27 = vpop.xlane.xlu0 %401 }
 0x12b   : > { %v1809_v47 = vcombine.low %v1800_v16, %v1807_v39  ;;  %v2805_v48 = vcombine.low %v1342_v32, %v1346_v33  ;;  %v2806_v49 = vcombine.low %v1350_v37, %v1354_v40  ;;  %v2807_v50 = vcombine.low %v1358_v41, %v1362_v42 }
 0x12c   : > { %3175 = vperm.xlu0 %3617, %v2804_v43   ;;  %v1816_v52 = vrot.slane %v1808_v44, %v4054_v61  ;;  %v2808_v53 = vcombine.low %v1366_v45, %v1370_v46  ;;  %v702_v54 = vrot.slane %v399_v38, %v3893_v2  ;;  %v706_v51 = vrot.slane %v399_v38, %v3896_v3 }
 0x12d   : > { %v1823_v60 = vrot.slane %v1809_v47, %v4054_v61  ;;  %v2815_v62 = vrot.slane %v2805_v48, %v4054_v61  ;;  %v2822_v63 = vrot.slane %v2806_v49, %v4054_v61  ;;  %v2829_v4 = vrot.slane %v2807_v50, %v4054_v61 }
 0x12e   : > { %v2836_v6 = vrot.slane %v2808_v53, %v4054_v61  ;;  %v710_v9 = vrot.slane %v399_v38, %v4036_v55  ;;  %v714_v59 = vrot.slane %v399_v38, %v4039_v56  ;;  %v718_v10 = vrot.slane %v399_v38, %v4042_v57  ;;  %v465_v53 = vpop.xlane.xlu1 %464 }
 0x12f   : > { %v1824_v11 = vcombine.low %v1816_v52, %v1823_v60  ;;  %v2837_v12 = vcombine.low %v2815_v62, %v2822_v63  ;;  %v722_v13 = vrot.slane %v399_v38, %v4045_v7  ;;  %v726_v14 = vrot.slane %v399_v38, %v4048_v8 }
 0x130   : > { %v2838_v15 = vcombine.low %v2829_v4, %v2836_v6  ;;  %v730_v17 = vrot.slane %v399_v38, %v4051_v58  ;;  %v1825_v18 = vcombine.low %v702_v54, %v706_v51  ;;  %v1826_v19 = vcombine.low %v710_v9, %v714_v59 }
 0x131   : > { %3115 = vperm.xlu1 %3618, %v1824_v11   ;;  %v2845_v34 = vrot.slane %v2837_v12, %v4054_v61  ;;  %v1827_v20 = vcombine.low %v718_v10, %v722_v13  ;;  %v1374_v21 = vrot.slane %v462_v5, %v3893_v2  ;;  %v1378_v22 = vrot.slane %v462_v5, %v3896_v3 }
 0x132   : > { %v2852_v23 = vrot.slane %v2838_v15, %v4054_v61  ;;  %v1828_v24 = vcombine.low %v726_v14, %v730_v17  ;;  %v1835_v25 = vrot.slane %v1825_v18, %v4054_v61  ;;  %v1842_v26 = vrot.slane %v1826_v19, %v4054_v61 }
 0x133   : > { %v1849_v28 = vrot.slane %v1827_v20, %v4054_v61  ;;  %v1382_v29 = vrot.slane %v462_v5, %v4036_v55  ;;  %v1386_v30 = vrot.slane %v462_v5, %v4039_v56  ;;  %v1390_v31 = vrot.slane %v462_v5, %v4042_v57  ;;  %v405_v20 = vpop.xlane.xlu0 %404 }
 0x134   : > { %v2853_v32 = vcombine.low %v2845_v34, %v2852_v23  ;;  %v1856_v33 = vrot.slane %v1828_v24, %v4054_v61  ;;  %v1857_v35 = vcombine.low %v1835_v25, %v1842_v26  ;;  %v1394_v36 = vrot.slane %v462_v5, %v4045_v7 }
 0x135   : > { %v1398_v16 = vrot.slane %v462_v5, %v4048_v8  ;;  %v1402_v37 = vrot.slane %v462_v5, %v4051_v58  ;;  %v2854_v38 = vcombine.low %v1374_v21, %v1378_v22  ;;  %v2855_v39 = vcombine.low %v1382_v29, %v1386_v30 }
 0x136   : > { %3178 = vperm.xlu0 %3617, %v2853_v32   ;;  %v1858_v40 = vcombine.low %v1849_v28, %v1856_v33  ;;  %v1865_v41 = vrot.slane %v1857_v35, %v4054_v61  ;;  %v2856_v42 = vcombine.low %v1390_v31, %v1394_v36  ;;  %v734_v43 = vrot.slane %v402_v27, %v3893_v2 }
 0x137   : > { %v2857_v44 = vcombine.low %v1398_v16, %v1402_v37  ;;  %v2864_v45 = vrot.slane %v2854_v38, %v4054_v61  ;;  %v2871_v46 = vrot.slane %v2855_v39, %v4054_v61  ;;  %v738_v47 = vrot.slane %v402_v27, %v3896_v3 }
 0x138   : > { %v1872_v48 = vrot.slane %v1858_v40, %v4054_v61  ;;  %v2878_v49 = vrot.slane %v2856_v42, %v4054_v61  ;;  %v742_v50 = vrot.slane %v402_v27, %v4036_v55  ;;  %v746_v52 = vrot.slane %v402_v27, %v4039_v56 }
 0x139   : > { %v2885_v54 = vrot.slane %v2857_v44, %v4054_v61  ;;  %v2886_v51 = vcombine.low %v2864_v45, %v2871_v46  ;;  %v750_v60 = vrot.slane %v402_v27, %v4042_v57  ;;  %v754_v62 = vrot.slane %v402_v27, %v4045_v7 }
 0x13a   : > { %v1873_v63 = vcombine.low %v1865_v41, %v1872_v48  ;;  %v758_v4 = vrot.slane %v402_v27, %v4048_v8  ;;  %v762_v5 = vrot.slane %v402_v27, %v4051_v58  ;;  %v1874_v6 = vcombine.low %v734_v43, %v738_v47  ;;  %v468_v41 = vpop.xlane.xlu1 %467 }
 0x13b   : > { %v2887_v9 = vcombine.low %v2878_v49, %v2885_v54  ;;  %v2894_v59 = vrot.slane %v2886_v51, %v4054_v61  ;;  %v1875_v10 = vcombine.low %v742_v50, %v746_v52  ;;  %v1876_v11 = vcombine.low %v750_v60, %v754_v62 }
 0x13c   : > { %3118 = vperm.xlu1 %3618, %v1873_v63   ;;  %v1877_v12 = vcombine.low %v758_v4, %v762_v5  ;;  %v1884_v13 = vrot.slane %v1874_v6, %v4054_v61  ;;  %v1406_v14 = vrot.slane %v465_v53, %v3893_v2  ;;  %v1410_v15 = vrot.slane %v465_v53, %v3896_v3 }
 0x13d   : > { %v2901_v17 = vrot.slane %v2887_v9, %v4054_v61  ;;  %v1891_v18 = vrot.slane %v1875_v10, %v4054_v61  ;;  %v1898_v19 = vrot.slane %v1876_v11, %v4054_v61  ;;  %v1414_v34 = vrot.slane %v465_v53, %v4036_v55 }
 0x13e   : > { %v1905_v21 = vrot.slane %v1877_v12, %v4054_v61  ;;  %v1418_v22 = vrot.slane %v465_v53, %v4039_v56  ;;  %v1422_v23 = vrot.slane %v465_v53, %v4042_v57  ;;  %v1426_v24 = vrot.slane %v465_v53, %v4045_v7 }
 0x13f   : > { %v2902_v25 = vcombine.low %v2894_v59, %v2901_v17  ;;  %v1906_v26 = vcombine.low %v1884_v13, %v1891_v18  ;;  %v1430_v27 = vrot.slane %v465_v53, %v4048_v8  ;;  %v1434_v28 = vrot.slane %v465_v53, %v4051_v58  ;;  %v408_v59 = vpop.xlane.xlu0 %407 }
 0x140   : > { %v1907_v29 = vcombine.low %v1898_v19, %v1905_v21  ;;  %v2903_v30 = vcombine.low %v1406_v14, %v1410_v15  ;;  %v2904_v31 = vcombine.low %v1414_v34, %v1418_v22  ;;  %v2905_v32 = vcombine.low %v1422_v23, %v1426_v24 }
 0x141   : > { %3181 = vperm.xlu0 %3617, %v2902_v25   ;;  %v1914_v33 = vrot.slane %v1906_v26, %v4054_v61  ;;  %v2906_v35 = vcombine.low %v1430_v27, %v1434_v28  ;;  %v766_v36 = vrot.slane %v405_v20, %v3893_v2  ;;  %v770_v16 = vrot.slane %v405_v20, %v3896_v3 }
 0x142   : > { %v1921_v37 = vrot.slane %v1907_v29, %v4054_v61  ;;  %v2913_v38 = vrot.slane %v2903_v30, %v4054_v61  ;;  %v2920_v39 = vrot.slane %v2904_v31, %v4054_v61  ;;  %v2927_v40 = vrot.slane %v2905_v32, %v4054_v61 }
 0x143   : > { %v2934_v42 = vrot.slane %v2906_v35, %v4054_v61  ;;  %v774_v43 = vrot.slane %v405_v20, %v4036_v55  ;;  %v778_v44 = vrot.slane %v405_v20, %v4039_v56  ;;  %v782_v45 = vrot.slane %v405_v20, %v4042_v57  ;;  %v471_v35 = vpop.xlane.xlu1 %470 }
 0x144   : > { %v1922_v46 = vcombine.low %v1914_v33, %v1921_v37  ;;  %v2935_v47 = vcombine.low %v2913_v38, %v2920_v39  ;;  %v786_v48 = vrot.slane %v405_v20, %v4045_v7  ;;  %v790_v49 = vrot.slane %v405_v20, %v4048_v8 }
 0x145   : > { %v2936_v50 = vcombine.low %v2927_v40, %v2934_v42  ;;  %v794_v52 = vrot.slane %v405_v20, %v4051_v58  ;;  %v1923_v53 = vcombine.low %v766_v36, %v770_v16  ;;  %v1924_v54 = vcombine.low %v774_v43, %v778_v44 }
 0x146   : > { %3121 = vperm.xlu1 %3618, %v1922_v46   ;;  %v2943_v51 = vrot.slane %v2935_v47, %v4054_v61  ;;  %v1925_v60 = vcombine.low %v782_v45, %v786_v48  ;;  %v1438_v62 = vrot.slane %v468_v41, %v3893_v2  ;;  %v1442_v63 = vrot.slane %v468_v41, %v3896_v3 }
 0x147   : > { %v2950_v4 = vrot.slane %v2936_v50, %v4054_v61  ;;  %v1926_v5 = vcombine.low %v790_v49, %v794_v52  ;;  %v1933_v6 = vrot.slane %v1923_v53, %v4054_v61  ;;  %v1940_v9 = vrot.slane %v1924_v54, %v4054_v61 }
 0x148   : > { %v1947_v10 = vrot.slane %v1925_v60, %v4054_v61  ;;  %v1446_v11 = vrot.slane %v468_v41, %v4036_v55  ;;  %v1450_v12 = vrot.slane %v468_v41, %v4039_v56  ;;  %v1454_v13 = vrot.slane %v468_v41, %v4042_v57  ;;  %v411_v60 = vpop.xlane.xlu0 %410 }
 0x149   : > { %v2951_v14 = vcombine.low %v2943_v51, %v2950_v4  ;;  %v1954_v15 = vrot.slane %v1926_v5, %v4054_v61  ;;  %v1955_v17 = vcombine.low %v1933_v6, %v1940_v9  ;;  %v1458_v18 = vrot.slane %v468_v41, %v4045_v7 }
 0x14a   : > { %v1462_v19 = vrot.slane %v468_v41, %v4048_v8  ;;  %v1466_v34 = vrot.slane %v468_v41, %v4051_v58  ;;  %v2952_v20 = vcombine.low %v1438_v62, %v1442_v63  ;;  %v2953_v21 = vcombine.low %v1446_v11, %v1450_v12 }
 0x14b   : > { %3184 = vperm.xlu0 %3617, %v2951_v14   ;;  %v1956_v22 = vcombine.low %v1947_v10, %v1954_v15  ;;  %v1963_v23 = vrot.slane %v1955_v17, %v4054_v61  ;;  %v2954_v24 = vcombine.low %v1454_v13, %v1458_v18  ;;  %v798_v25 = vrot.slane %v408_v59, %v3893_v2 }
 0x14c   : > { %v2955_v26 = vcombine.low %v1462_v19, %v1466_v34  ;;  %v2962_v27 = vrot.slane %v2952_v20, %v4054_v61  ;;  %v2969_v28 = vrot.slane %v2953_v21, %v4054_v61  ;;  %v802_v29 = vrot.slane %v408_v59, %v3896_v3 }
 0x14d   : > { %v1970_v30 = vrot.slane %v1956_v22, %v4054_v61  ;;  %v2976_v31 = vrot.slane %v2954_v24, %v4054_v61  ;;  %v806_v32 = vrot.slane %v408_v59, %v4036_v55  ;;  %v810_v33 = vrot.slane %v408_v59, %v4039_v56 }
 0x14e   : > { %v2983_v36 = vrot.slane %v2955_v26, %v4054_v61  ;;  %v2984_v16 = vcombine.low %v2962_v27, %v2969_v28  ;;  %v814_v37 = vrot.slane %v408_v59, %v4042_v57  ;;  %v818_v38 = vrot.slane %v408_v59, %v4045_v7 }
 0x14f   : > { %v1971_v39 = vcombine.low %v1963_v23, %v1970_v30  ;;  %v822_v40 = vrot.slane %v408_v59, %v4048_v8  ;;  %v826_v41 = vrot.slane %v408_v59, %v4051_v58  ;;  %v1972_v42 = vcombine.low %v798_v25, %v802_v29  ;;  %v474_v23 = vpop.xlane.xlu1 %473 }
 0x150   : > { %v2985_v43 = vcombine.low %v2976_v31, %v2983_v36  ;;  %v2992_v44 = vrot.slane %v2984_v16, %v4054_v61  ;;  %v1973_v45 = vcombine.low %v806_v32, %v810_v33  ;;  %v1974_v46 = vcombine.low %v814_v37, %v818_v38  ;;  %v414_v32 = vpop.xlane.xlu0 %413 }
 0x151   : > { %3124 = vperm.xlu1 %3618, %v1971_v39   ;;  %v1975_v47 = vcombine.low %v822_v40, %v826_v41  ;;  %v1982_v48 = vrot.slane %v1972_v42, %v4054_v61  ;;  %v1470_v49 = vrot.slane %v471_v35, %v3893_v2  ;;  %v1474_v50 = vrot.slane %v471_v35, %v3896_v3 }
 0x152   : > { %v2999_v52 = vrot.slane %v2985_v43, %v4054_v61  ;;  %v1989_v53 = vrot.slane %v1973_v45, %v4054_v61  ;;  %v1996_v54 = vrot.slane %v1974_v46, %v4054_v61  ;;  %v1478_v51 = vrot.slane %v471_v35, %v4036_v55 }
 0x153   : > { %v2003_v62 = vrot.slane %v1975_v47, %v4054_v61  ;;  %v1482_v63 = vrot.slane %v471_v35, %v4039_v56  ;;  %v1486_v4 = vrot.slane %v471_v35, %v4042_v57  ;;  %v1490_v5 = vrot.slane %v471_v35, %v4045_v7 }
 0x154   : > { %v3000_v6 = vcombine.low %v2992_v44, %v2999_v52  ;;  %v2004_v9 = vcombine.low %v1982_v48, %v1989_v53  ;;  %v1494_v59 = vrot.slane %v471_v35, %v4048_v8  ;;  %v1498_v10 = vrot.slane %v471_v35, %v4051_v58 }
 0x155   : > { %v2005_v11 = vcombine.low %v1996_v54, %v2003_v62  ;;  %v3001_v12 = vcombine.low %v1470_v49, %v1474_v50  ;;  %v3002_v13 = vcombine.low %v1478_v51, %v1482_v63  ;;  %v3003_v14 = vcombine.low %v1486_v4, %v1490_v5  ;;  %v417_v63 = vpop.xlane.xlu0 %416 }
 0x156   : > { %3187 = vperm.xlu0 %3617, %v3000_v6   ;;  %v2012_v15 = vrot.slane %v2004_v9, %v4054_v61  ;;  %v3004_v17 = vcombine.low %v1494_v59, %v1498_v10  ;;  %v830_v18 = vrot.slane %v411_v60, %v3893_v2  ;;  %v834_v19 = vrot.slane %v411_v60, %v3896_v3 }
 0x157   : > { %v2019_v34 = vrot.slane %v2005_v11, %v4054_v61  ;;  %v3011_v20 = vrot.slane %v3001_v12, %v4054_v61  ;;  %v3018_v21 = vrot.slane %v3002_v13, %v4054_v61  ;;  %v3025_v22 = vrot.slane %v3003_v14, %v4054_v61 }
 0x158   : > { %v3032_v24 = vrot.slane %v3004_v17, %v4054_v61  ;;  %v838_v25 = vrot.slane %v411_v60, %v4036_v55  ;;  %v842_v26 = vrot.slane %v411_v60, %v4039_v56  ;;  %v846_v27 = vrot.slane %v411_v60, %v4042_v57 }
 0x159   : > { %v2020_v28 = vcombine.low %v2012_v15, %v2019_v34  ;;  %v3033_v29 = vcombine.low %v3011_v20, %v3018_v21  ;;  %v850_v30 = vrot.slane %v411_v60, %v4045_v7  ;;  %v854_v31 = vrot.slane %v411_v60, %v4048_v8 }
 0x15a   : > { %v3034_v33 = vcombine.low %v3025_v22, %v3032_v24  ;;  %v858_v35 = vrot.slane %v411_v60, %v4051_v58  ;;  %v2021_v36 = vcombine.low %v830_v18, %v834_v19  ;;  %v2022_v16 = vcombine.low %v838_v25, %v842_v26 }
 0x15b   : > { %3127 = vperm.xlu1 %3618, %v2020_v28   ;;  %v3041_v37 = vrot.slane %v3033_v29, %v4054_v61  ;;  %v2023_v38 = vcombine.low %v846_v27, %v850_v30  ;;  %v1502_v39 = vrot.slane %v474_v23, %v3893_v2  ;;  %v1506_v40 = vrot.slane %v474_v23, %v3896_v3  ;;  %v420_v29 = vpop.xlane.xlu0 %419 }
 0x15c   : > { %v3048_v41 = vrot.slane %v3034_v33, %v4054_v61  ;;  %v2024_v42 = vcombine.low %v854_v31, %v858_v35  ;;  %v2031_v43 = vrot.slane %v2021_v36, %v4054_v61  ;;  %v2038_v44 = vrot.slane %v2022_v16, %v4054_v61 }
 0x15d   : > { %v2045_v45 = vrot.slane %v2023_v38, %v4054_v61  ;;  %v1510_v46 = vrot.slane %v474_v23, %v4036_v55  ;;  %v1514_v47 = vrot.slane %v474_v23, %v4039_v56  ;;  %v1518_v48 = vrot.slane %v474_v23, %v4042_v57 }
 0x15e   : > { %v3049_v49 = vcombine.low %v3041_v37, %v3048_v41  ;;  %v2052_v50 = vrot.slane %v2024_v42, %v4054_v61  ;;  %v2053_v52 = vcombine.low %v2031_v43, %v2038_v44  ;;  %v1522_v53 = vrot.slane %v474_v23, %v4045_v7 }
 0x15f   : > { %v1526_v54 = vrot.slane %v474_v23, %v4048_v8  ;;  %v1530_v51 = vrot.slane %v474_v23, %v4051_v58  ;;  %v3050_v60 = vcombine.low %v1502_v39, %v1506_v40  ;;  %v3051_v62 = vcombine.low %v1510_v46, %v1514_v47 }
 0x160   : > { %3190 = vperm.xlu0 %3617, %v3049_v49   ;;  %v2054_v4 = vcombine.low %v2045_v45, %v2052_v50  ;;  %v2061_v5 = vrot.slane %v2053_v52, %v4054_v61  ;;  %v3052_v6 = vcombine.low %v1518_v48, %v1522_v53  ;;  %v862_v9 = vrot.slane %v414_v32, %v3893_v2 }
 0x161   : > { %v3053_v59 = vcombine.low %v1526_v54, %v1530_v51  ;;  %v3060_v10 = vrot.slane %v3050_v60, %v4054_v61  ;;  %v3067_v11 = vrot.slane %v3051_v62, %v4054_v61  ;;  %v866_v12 = vrot.slane %v414_v32, %v3896_v3  ;;  %v423_v51 = vpop.xlane.xlu0 %422 }
 0x162   : > { %v2068_v13 = vrot.slane %v2054_v4, %v4054_v61  ;;  %v3074_v14 = vrot.slane %v3052_v6, %v4054_v61  ;;  %v870_v15 = vrot.slane %v414_v32, %v4036_v55  ;;  %v874_v17 = vrot.slane %v414_v32, %v4039_v56 }
 0x163   : > { %v3081_v18 = vrot.slane %v3053_v59, %v4054_v61  ;;  %v3082_v19 = vcombine.low %v3060_v10, %v3067_v11  ;;  %v878_v34 = vrot.slane %v414_v32, %v4042_v57  ;;  %v882_v20 = vrot.slane %v414_v32, %v4045_v7 }
 0x164   : > { %v2069_v21 = vcombine.low %v2061_v5, %v2068_v13  ;;  %v886_v22 = vrot.slane %v414_v32, %v4048_v8  ;;  %v890_v23 = vrot.slane %v414_v32, %v4051_v58  ;;  %v2070_v24 = vcombine.low %v862_v9, %v866_v12 }
 0x165   : > { %v3083_v25 = vcombine.low %v3074_v14, %v3081_v18  ;;  %v3090_v26 = vrot.slane %v3082_v19, %v4054_v61  ;;  %v2071_v27 = vcombine.low %v870_v15, %v874_v17  ;;  %v2072_v28 = vcombine.low %v878_v34, %v882_v20 }
 0x166   : > { %3130 = vperm.xlu1 %3618, %v2069_v21   ;;  %v2073_v30 = vcombine.low %v886_v22, %v890_v23  ;;  %v2080_v31 = vrot.slane %v2070_v24, %v4054_v61  ;;  %v894_v33 = vrot.slane %v417_v63, %v3893_v2  ;;  %v898_v35 = vrot.slane %v417_v63, %v3896_v3 }
 0x167   : > { %v3097_v36 = vrot.slane %v3083_v25, %v4054_v61  ;;  %v2087_v16 = vrot.slane %v2071_v27, %v4054_v61  ;;  %v2094_v32 = vrot.slane %v2072_v28, %v4054_v61  ;;  %v902_v37 = vrot.slane %v417_v63, %v4036_v55 }
 0x168   : > { %v2101_v38 = vrot.slane %v2073_v30, %v4054_v61  ;;  %v906_v39 = vrot.slane %v417_v63, %v4039_v56  ;;  %v910_v40 = vrot.slane %v417_v63, %v4042_v57  ;;  %v914_v41 = vrot.slane %v417_v63, %v4045_v7 }
 0x169   : > { %v3098_v42 = vcombine.low %v3090_v26, %v3097_v36  ;;  %v2102_v43 = vcombine.low %v2080_v31, %v2087_v16  ;;  %v918_v44 = vrot.slane %v417_v63, %v4048_v8  ;;  %v922_v45 = vrot.slane %v417_v63, %v4051_v58  ;;  %v426_v26 = vpop.xlane.xlu0 %425 }
 0x16a   : > { %v2103_v46 = vcombine.low %v2094_v32, %v2101_v38  ;;  %v2119_v47 = vcombine.low %v894_v33, %v898_v35  ;;  %v2120_v48 = vcombine.low %v902_v37, %v906_v39  ;;  %v2121_v49 = vcombine.low %v910_v40, %v914_v41 }
 0x16b   : > { %3193 = vperm.xlu0 %3617, %v3098_v42   ;;  %v2110_v50 = vrot.slane %v2102_v43, %v4054_v61  ;;  %v2122_v52 = vcombine.low %v918_v44, %v922_v45  ;;  %v926_v53 = vrot.slane %v420_v29, %v3893_v2  ;;  %v930_v54 = vrot.slane %v420_v29, %v3896_v3 }
 0x16c   : > { %v2117_v60 = vrot.slane %v2103_v46, %v4054_v61  ;;  %v2129_v62 = vrot.slane %v2119_v47, %v4054_v61  ;;  %v2136_v4 = vrot.slane %v2120_v48, %v4054_v61  ;;  %v2143_v63 = vrot.slane %v2121_v49, %v4054_v61 }
 0x16d   : > { %v2150_v5 = vrot.slane %v2122_v52, %v4054_v61  ;;  %v934_v6 = vrot.slane %v420_v29, %v4036_v55  ;;  %v938_v9 = vrot.slane %v420_v29, %v4039_v56  ;;  %v942_v59 = vrot.slane %v420_v29, %v4042_v57 }
 0x16e   : > { %v2118_v10 = vcombine.low %v2110_v50, %v2117_v60  ;;  %v2151_v11 = vcombine.low %v2129_v62, %v2136_v4  ;;  %v946_v12 = vrot.slane %v420_v29, %v4045_v7  ;;  %v950_v13 = vrot.slane %v420_v29, %v4048_v8 }
 0x16f   : > { %v2152_v14 = vcombine.low %v2143_v63, %v2150_v5  ;;  %v954_v15 = vrot.slane %v420_v29, %v4051_v58  ;;  %v2168_v17 = vcombine.low %v926_v53, %v930_v54  ;;  %v2169_v18 = vcombine.low %v934_v6, %v938_v9 }
 0x170   : > { %3133 = vperm.xlu1 %3618, %v2118_v10   ;;  %v2159_v19 = vrot.slane %v2151_v11, %v4054_v61  ;;  %v2170_v34 = vcombine.low %v942_v59, %v946_v12  ;;  %v958_v20 = vrot.slane %v423_v51, %v3893_v2  ;;  %v962_v21 = vrot.slane %v423_v51, %v3896_v3 }
 0x171   : > { %v2166_v22 = vrot.slane %v2152_v14, %v4054_v61  ;;  %v2171_v23 = vcombine.low %v950_v13, %v954_v15  ;;  %v2178_v24 = vrot.slane %v2168_v17, %v4054_v61  ;;  %v2185_v25 = vrot.slane %v2169_v18, %v4054_v61  ;;  %v3104_v17 = vpop.permute.xlu1 %3103 }
 0x172   : > { %v2192_v27 = vrot.slane %v2170_v34, %v4054_v61  ;;  %v966_v28 = vrot.slane %v423_v51, %v4036_v55  ;;  %v970_v29 = vrot.slane %v423_v51, %v4039_v56  ;;  %v974_v30 = vrot.slane %v423_v51, %v4042_v57 }
 0x173   : > { %v2167_v31 = vcombine.low %v2159_v19, %v2166_v22  ;;  %v2199_v33 = vrot.slane %v2171_v23, %v4054_v61  ;;  %v2200_v35 = vcombine.low %v2178_v24, %v2185_v25  ;;  %v978_v36 = vrot.slane %v423_v51, %v4045_v7  ;;  %v3101_v22 = vpop.permute.xlu0 %3100 }
 0x174   : > { %v982_v16 = vrot.slane %v423_v51, %v4048_v8  ;;  %v986_v32 = vrot.slane %v423_v51, %v4051_v58  ;;  %v2217_v37 = vcombine.low %v958_v20, %v962_v21  ;;  %v2218_v38 = vcombine.low %v966_v28, %v970_v29 }
 0x175   : > { %3136 = vperm.xlu1 %3618, %v2167_v31   ;;  %v2201_v39 = vcombine.low %v2192_v27, %v2199_v33  ;;  %v2208_v40 = vrot.slane %v2200_v35, %v4054_v61  ;;  %v2219_v41 = vcombine.low %v974_v30, %v978_v36  ;;  %v990_v42 = vrot.slane %v426_v26, %v3893_v2  ;;  %v3149_v18 = vpop.permute.xlu1 %3148 }
 0x176   : > { %v2220_v43 = vcombine.low %v982_v16, %v986_v32  ;;  %v2227_v44 = vrot.slane %v2217_v37, %v4054_v61  ;;  %v2234_v45 = vrot.slane %v2218_v38, %v4054_v61  ;;  %v994_v46 = vrot.slane %v426_v26, %v3896_v3 }
 0x177   : > { %v2215_v47 = vrot.slane %v2201_v39, %v4054_v61  ;;  %v2241_v48 = vrot.slane %v2219_v41, %v4054_v61  ;;  %v998_v49 = vrot.slane %v426_v26, %v4036_v55  ;;  %v1002_v50 = vrot.slane %v426_v26, %v4039_v56  ;;  %v3161_v23 = vpop.permute.xlu0 %3160 }
 0x178   : > { %v2248_v52 = vrot.slane %v2220_v43, %v4054_v61  ;;  %v2249_v53 = vcombine.low %v2227_v44, %v2234_v45  ;;  %v1006_v2 = vrot.slane %v426_v26, %v4042_v57  ;;  %v1010_v54 = vrot.slane %v426_v26, %v4045_v7 }
 0x179   : > { %v2216_v51 = vcombine.low %v2208_v40, %v2215_v47  ;;  %v1014_v60 = vrot.slane %v426_v26, %v4048_v8  ;;  %v1018_v3 = vrot.slane %v426_v26, %v4051_v58  ;;  %v2266_v62 = vcombine.low %v990_v42, %v994_v46  ;;  %v3152_v19 = vpop.permute.xlu1 %3151 }
 0x17a   : > { %v2250_v4 = vcombine.low %v2241_v48, %v2248_v52  ;;  %v2257_v63 = vrot.slane %v2249_v53, %v4054_v61  ;;  %v2267_v5 = vcombine.low %v998_v49, %v1002_v50  ;;  %v2268_v55 = vcombine.low %v1006_v2, %v1010_v54 }
 0x17b   : > { %3139 = vperm.xlu1 %3618, %v2216_v51   ;;  %v2269_v56 = vcombine.low %v1014_v60, %v1018_v3  ;;  %v2276_v6 = vrot.slane %v2266_v62, %v4054_v61  ;;  %v3742_v15 = vmov 0.0   ;;  %v4566_v32 = vand.u32 127, %v233_v0 }
 0x17c   : > { %v2264_v9 = vrot.slane %v2250_v4, %v4054_v61  ;;  %v2283_v57 = vrot.slane %v2267_v5, %v4054_v61  ;;  %v2290_v7 = vrot.slane %v2268_v55, %v4054_v61  ;;  %237 = vst.msk [vmem:[#allocation2] sm:$0x3] %vm4535_vm0, %v3742_v15 }
 0x17d   : > { %v2297_v8 = vrot.slane %v2269_v56, %v4054_v61  ;;  %v3107_v34 = vpop.permute.xlu1 %3106  ;;  %v3201_v38 = vadd.s32 4294967288, %v4566_v32  ;;  %v3208_v39 = vadd.s32 4294967280, %v4566_v32  ;;  %v3215_v40 = vadd.s32 4294967272, %v4566_v32 }
 0x17e   : > { %v2265_v59 = vcombine.low %v2257_v63, %v2264_v9  ;;  %v2298_v58 = vcombine.low %v2276_v6, %v2283_v57  ;;  %v3222_v41 = vadd.s32 4294967264, %v4566_v32  ;;  %v3199_v0 = vsub.s32 %v4566_v32, %v3890_v1 }
 0x17f   : > { %v2299_v10 = vcombine.low %v2290_v7, %v2297_v8  ;;  %v3204_v43 = vsub.s32 %v3201_v38, %v3890_v1  ;;  %v3211_v45 = vsub.s32 %v3208_v39, %v3890_v1  ;;  %v3229_v47 = vadd.s32 4294967256, %v4566_v32 }
 0x180   : > { %3142 = vperm.xlu1 %3618, %v2265_v59   ;;  %v2306_v11 = vrot.slane %v2298_v58, %v4054_v61  ;;  %v3218_v48 = vsub.s32 %v3215_v40, %v3890_v1  ;;  %v4585_v49 = vsub.s32 %v3222_v41, %v3890_v1  ;;  %v3309_v52 = vrot.slane %v3149_v18, %v3199_v0 }
 0x181   : > { %v2313_v12 = vrot.slane %v2299_v10, %v4054_v61  ;;  %v4543_v25 = vpop.permute.xlu0 %3163  ;;  %v3313_v46 = vrot.slane %v3152_v19, %v3204_v43  ;;  %v3205_v2 = vrot.slane %v3104_v17, %v3204_v43  ;;  %v3200_v51 = vrot.slane %v3101_v22, %v3199_v0 }
 0x182   : > { %v3212_v3 = vrot.slane %v3107_v34, %v3211_v45  ;;  %v3232_v62 = vsub.s32 %v3229_v47, %v3890_v1  ;;  %v3328_v63 = vrot.slane %v3161_v23, %v4585_v49  ;;  %v3236_v55 = vadd.s32 4294967248, %v4566_v32 }
 0x183   : > { %v2314_v13 = vcombine.low %v2306_v11, %v2313_v12  ;;  %v3314_v60 = vsel %vm3206_vm1, %v3313_v46, %v3309_v52  ;;  %v3207_v6 = vsel %vm3206_vm1, %v3205_v2, %v3200_v51  ;;  %v3243_v9 = vadd.s32 4294967240, %v4566_v32 }
 0x184   : > { %v3250_v57 = vadd.s32 4294967232, %v4566_v32  ;;  %v3214_v7 = vsel %vm3213_vm2, %v3212_v3, %v3207_v6  ;;  %v3333_v8 = vrot.slane %v4543_v25, %v3232_v62  ;;  %v3257_v59 = vadd.s32 4294967224, %v4566_v32 }
 0x185   : > { %3145 = vperm.xlu1 %3618, %v2314_v13   ;;  %v3239_v58 = vsub.s32 %v3236_v55, %v3890_v1  ;;  %v3264_v13 = vadd.s32 4294967216, %v4566_v32  ;;  %v3271_v15 = vadd.s32 4294967208, %v4566_v32  ;;  %v3246_v17 = vsub.s32 %v3243_v9, %v3890_v1 }
 0x186   : > { %v3155_v20 = vpop.permute.xlu1 %3154  ;;  %v3253_v18 = vsub.s32 %v3250_v57, %v3890_v1  ;;  %v3278_v19 = vadd.s32 4294967200, %v4566_v32  ;;  %v3260_v22 = vsub.s32 %v3257_v59, %v3890_v1  ;;  %v3285_v25 = vadd.s32 4294967192, %v4566_v32 }
 0x187   : > { %v3318_v50 = vrot.slane %v3155_v20, %v3211_v45  ;;  %v3267_v39 = vsub.s32 %v3264_v13, %v3890_v1  ;;  %v3274_v40 = vsub.s32 %v3271_v15, %v3890_v1  ;;  %v3299_v47 = vadd.s32 4294967176, %v4566_v32 }
 0x188   : > { %v3281_v43 = vsub.s32 %v3278_v19, %v3890_v1 }
 0x189   : > { %v3319_v5 = vsel %vm3213_vm2, %v3318_v50, %v3314_v60  ;;  %v3288_v50 = vsub.s32 %v3285_v25, %v3890_v1  ;;  %v3412_v25 = vstv %s3411_s9 }
 0x18b   : > { %v4547_v27 = vpop.permute.xlu0 %3166 }
 0x18c   : > { %v3338_v23 = vrot.slane %v4547_v27, %v3239_v58  ;;  %v3292_v27 = vadd.s32 4294967184, %v4566_v32 }
 0x191   : > { %v4541_v21 = vpop.permute.xlu1 %3109 }
 0x192   : > { %v3219_v34 = vrot.slane %v4541_v21, %v3218_v48 }
 0x194   : > { %v3221_v0 = vsel %vm3220_vm3, %v3219_v34, %v3214_v7 }
 0x196   : > { %v4551_v29 = vpop.permute.xlu0 %3169 }
 0x19b   : > { %v3158_v24 = vpop.permute.xlu1 %3157 }
 0x19c   : > { %v3323_v53 = vrot.slane %v3158_v24, %v3218_v48 }
 0x19e   : > { %v3324_v56 = vsel %vm3220_vm3, %v3323_v53, %v3319_v5 }
 0x19f   : > { %v3329_v10 = vsel %vm3227_vm4, %v3328_v63, %v3324_v56 }
 0x1a0   : > { %v4555_v31 = vpop.permute.xlu0 %3172  ;;  %v3334_v20 = vsel %vm3234_vm5, %v3333_v8, %v3329_v10 }
 0x1a1   : > { %v3339_v21 = vsel %vm3241_vm6, %v3338_v23, %v3334_v20 }
 0x1a6   : > { %v4545_v26 = vpop.permute.xlu1 %3112 }
 0x1a7   : > { %v3226_v24 = vrot.slane %v4545_v26, %v4585_v49  ;;  %v3348_v49 = vrot.slane %v4555_v31, %v3253_v18  ;;  %v3295_v31 = vsub.s32 %v3292_v27, %v3890_v1 }
 0x1a9   : > { %v3228_v48 = vsel %vm3227_vm4, %v3226_v24, %v3221_v0 }
 0x1ab   : > { %v4559_v35 = vpop.permute.xlu0 %3175 }
 0x1ac   : > { %v3353_v2 = vrot.slane %v4559_v35, %v3260_v22 }
 0x1b0   : > { %v4549_v28 = vpop.permute.xlu1 %3115 }
 0x1b1   : > { %v3233_v38 = vrot.slane %v4549_v28, %v3232_v62  ;;  %v3343_v28 = vrot.slane %v4551_v29, %v3246_v17  ;;  %v3302_v62 = vsub.s32 %v3299_v47, %v3890_v1 }
 0x1b3   : > { %v3344_v52 = vsel %vm3248_vm7, %v3343_v28, %v3339_v21  ;;  %v3235_v53 = vsel %vm3234_vm5, %v3233_v38, %v3228_v48 }
 0x1b4   : > { %v3349_v35 = vsel %vm3255_vm8, %v3348_v49, %v3344_v52 }
 0x1b5   : > { %v4563_v16 = vpop.permute.xlu0 %3178  ;;  %v3354_v55 = vsel %vm3262_vm9, %v3353_v2, %v3349_v35 }
 0x1b6   : > { %v3358_v32 = vrot.slane %v4563_v16, %v3267_v39 }
 0x1bb   : > { %v4553_v30 = vpop.permute.xlu1 %3118 }
 0x1bc   : > { %v3240_v41 = vrot.slane %v4553_v30, %v3239_v58 }
 0x1c0   : > { %v4574_v42 = vpop.permute.xlu0 %3181 }
 0x1c1   : > { %v3363_v60 = vrot.slane %v4574_v42, %v3274_v40 }
 0x1c5   : > { %v4557_v33 = vpop.permute.xlu1 %3121 }
 0x1c6   : > { %v3247_v46 = vrot.slane %v4557_v33, %v3246_v17  ;;  %v3242_v33 = vsel %vm3241_vm6, %v3240_v41, %v3235_v53 }
 0x1ca   : > { %v4587_v54 = vpop.permute.xlu0 %3184 }
 0x1cb   : > { %v3368_v5 = vrot.slane %v4587_v54, %v3281_v43 }
 0x1d0   : > { %v4561_v36 = vpop.permute.xlu1 %3124 }
 0x1d1   : > { %v3254_v30 = vrot.slane %v4561_v36, %v3253_v18  ;;  %v3249_v36 = vsel %vm3248_vm7, %v3247_v46, %v3242_v33 }
 0x1d5   : > { %v4603_v11 = vpop.permute.xlu0 %3187 }
 0x1d6   : > { %v3373_v42 = vrot.slane %v4603_v11, %v3288_v50 }
 0x1da   : > { %v4568_v37 = vpop.permute.xlu1 %3127 }
 0x1db   : > { %v3261_v29 = vrot.slane %v4568_v37, %v3260_v22  ;;  %v3256_v37 = vsel %vm3255_vm8, %v3254_v30, %v3249_v36  ;;  %v378_v22 = vld [vmem:[#allocation2] sm:$0x3] }
 0x1dd   : > { %v3263_v56 = vsel %vm3262_vm9, %v3261_v29, %v3256_v37 }
 0x1df   : > { %v3191_v26 = vpop.permute.xlu0 %3190 }
 0x1e0   : > { %v3378_v9 = vrot.slane %v3191_v26, %v3295_v31 }
 0x1e5   : > { %v4577_v44 = vpop.permute.xlu1 %3130 }
 0x1e6   : > { %v3268_v51 = vrot.slane %v4577_v44, %v3267_v39 }
 0x1e8   : > { %v3270_v1 = vsel %vm3269_vm10, %v3268_v51, %v3263_v56 }
 0x1ea   : > { %v3194_v16 = vpop.permute.xlu0 %3193 }
 0x1eb   : > { %v3383_v8 = vrot.slane %v3194_v16, %v3302_v62 }
 0x1ef   : > { %v4590_v4 = vpop.permute.xlu1 %3133 }
 0x1f0   : > { %v3275_v3 = vrot.slane %v4590_v4, %v3274_v40  ;;  %v3359_v4 = vsel %vm3269_vm10, %v3358_v32, %v3354_v55 }
 0x1f1   : > { %v3364_v7 = vsel %vm3276_vm11, %v3363_v60, %v3359_v4 }
 0x1f2   : > { %v3277_v54 = vsel %vm3276_vm11, %v3275_v3, %v3270_v1  ;;  %v3369_v59 = vsel %vm3283_vm12, %v3368_v5, %v3364_v7 }
 0x1f3   : > { %v3374_v11 = vsel %vm3290_vm13, %v3373_v42, %v3369_v59 }
 0x1f4   : > { %v4605_v12 = vpop.permute.xlu1 %3136  ;;  %v3379_v15 = vsel %vm3297_vm14, %v3378_v9, %v3374_v11 }
 0x1f5   : > { %v3282_v44 = vrot.slane %v4605_v12, %v3281_v43  ;;  %v3384_v18 = vsel %vm3304_vm15, %v3383_v8, %v3379_v15 }
 0x1f7   : > { %v3284_v58 = vsel %vm3283_vm12, %v3282_v44, %v3277_v54 }
 0x1fa   : > { %v3140_v45 = vpop.permute.xlu1 %3139 }
 0x1fb   : > { %v3289_v6 = vrot.slane %v3140_v45, %v3288_v50 }
 0x1fd   : > { %v3291_v12 = vsel %vm3290_vm13, %v3289_v6, %v3284_v58 }
 0x1ff   : > { %v3143_v63 = vpop.permute.xlu1 %3142 }
 0x200   : > { %v3296_v57 = vrot.slane %v3143_v63, %v3295_v31 }
 0x202   : > { %v3298_v17 = vsel %vm3297_vm14, %v3296_v57, %v3291_v12 }
 0x204   : > { %v3146_v10 = vpop.permute.xlu1 %3145 }
 0x205   : > { %v3303_v13 = vrot.slane %v3146_v10, %v3302_v62 }
 0x207   : > { %v3305_v19 = vsel %vm3304_vm15, %v3303_v13, %v3298_v17 }
 0x208   : > { %v3385_v34 = vcombine.low %v3305_v19, %v3384_v18 }
 0x20a   : > { %v3392_v20 = vrot.slane %v3385_v34, %v4054_v61 }
 0x20c   : > { %v3399_v23 = vrot.slane %v3392_v20, %v4054_v61 }
 0x20e   : > { %v3401_v24 = vadd.f32 %v3399_v23, %v378_v22 }
 0x210   : > { %3406 = vst.msk [vmem:[#allocation2] sm:$0x3] %vm4535_vm0, %v3401_v24 }
 0x217   : > { %v3410_v38 = vld [vmem:[#allocation2] sm:$0x3] }
 0x218   : > { %v3413_v39 = vadd.f32 %v3412_v25, %v3410_v38 }
 0x21a   : > { %v3541_v40 = vmul.f32 -1.442695, %v3413_v39 }
 0x21c   : > { %3619 = vpow2.f32 %v3541_v40 }
 0x226   : > { %v3620_v21 = vpop.eup %3619 }
 0x227   : > { %v3417_v41 = vadd.f32 1.0, %v3620_v21 }
 0x229   : > { %3621 = vrcp.f32 %v3417_v41 }
 0x233   : > { %v3622_v61 = vpop.eup %3621 }
 0x234   : > { %3420 = vst.msk [vmem:[%s220_s20] sm:$0x3] %vm4535_vm0, %v3622_v61 }
 0x235   : > { %3666 = shalt.err (!%p3663_p5)
}
 0x236   : > { %s3667_s8 = scalar_lea.hbm %s4670_s29, 32  ;;  %s3671_s2 = scalar_lea.hbm %s4724_s3, 64 }
 0x237   : > { %p3668_p4 = scmp.ne.s32.totalorder %s4670_s29, %s3667_s8  ;;  %p3672_p12 = scmp.lt.u32.totalorder %s4670_s29, %s4724_s3 }
 0x238   : > { %p3673_p1 = scmp.lt.u32.totalorder %s3671_s2, %s3667_s8  ;;  %p3675_p8 = scmp.lt.u32.totalorder %s3667_s8, %s4670_s29 }
 0x239   : > { %p3669_p7 = pnand %p3668_p4, %p4734_p9 }
 0x23a   : > { %p3674_p3 = por %p3673_p1, %p3672_p12 }
 0x23b   : > { %p3670_p10 = pneg %p3669_p7 }
 0x23c   : > { %p3676_p11 = por %p3675_p8, %p3674_p3 }
 0x23e   : > { %p3677_p0 = pnand %p3676_p11, %p3670_p10 }
 0x240   : > { %3680 = shalt.err (!%p3677_p0)
}
 0x241   : > { %3552 = dma.vmem_to_hbm [thread:$0]  (%p4734_p9), %s4672_s22, 32, %s4670_s29, %s3422_s30  }
 0x242 PF: > { %s3448_s9 = sand.u32 1, %s3715_s14   ;;  %p4735_p6 = scmp.ne.s32.totalorder %s4729_s28, 0 }
 0x243   : > { %p4736_p13 = scmp.ge.s32.totalorder %s3735_s19, 2  ;;  %s3449_s10 = scalar_lea.sflag [#allocation6], %s3448_s9 }
 0x245   : > { %p3559_p2 = pnand %p4736_p13, %p4735_p6 }
 0x247   : > { %3710 = dma.done.wait (!%p3559_p2), %s3449_s10, 32  }
 0x248   : > { %3712 = vsyncadd (!%p3559_p2), %s3449_s10, 4294967264  ;;  %s20_s19 = sadd.s32 1, %s3735_s19   ;;  %s4737_s14 = smov %s3719_s15 }
 0x249   : > { %p17_p5 = scmp.ge.s32.totalorder %s20_s19, 4   ;;  %s4738_s15 = smov %s3723_s16 }
 0x24a   : > { %s4739_s16 = smov %s3823_s27  ;;  %s4740_s17 = smov %s3731_s18 }
 0x24b   : > { %s4741_s18 = smov %s4743_s21  ;;  %19 = sbr.rel (!%p17_p5) target bundleno = 8 (0x8), region = 88 }
 0x252   :  { %3454 = vsyncpa [#allocation5], 1 }
 0x253   :  { %3456 = vsyncpa [#allocation5 + $0x1], 1 }
 0x254   :  { %3457 = vsyncpa [#allocation6], 1 }
 0x255   :  { %3459 = vsyncpa [#allocation6 + $0x1], 1 }

</bundles_post_ra>
